<compile_context>
chip_gen: v7x
topology: tpu7x:2x2x1
jax: 0.10.0
libtpu: 0.0.40
codegen_flags: <defaults>
</compile_context>

<pallas_src>
import functools

import jax
import jax.numpy as jnp
from jax.experimental import pallas as pl
from jax.experimental.pallas import tpu as pltpu


OUT_PAD = 128  # lane-dense padded width for the (B, output_size) head output


# ----------------------------------------------------------------------------
# Fused kernel: all LSTM layers + head in one pallas_call (no grid).
# ----------------------------------------------------------------------------
def _fused_forward_kernel(*refs, num_layers, hidden_size, seq_len, batch):
    """refs layout (inputs, outputs, scratch):
      x2d_ref          (T*B, I)      time-major flattened input (row = t*B + b)
      h0_ref, c0_ref   (L, B, H)     initial hidden / cell state
      wih[l]           (in_l, 4H)    W_ih^T, PyTorch gate order i,f,g,o
      whh[l]           (H, 4H)       W_hh^T
      b[l]             (1, 4H)       b_ih + b_hh
      w1, b1           (H, 64),(1,64)        fc1 with BatchNorm1d(H) folded in
      w2, b2           (64, OUT_PAD),(1,OUT_PAD)  fc2 with BatchNorm1d(64) folded in
      out_ref          (B, OUT_PAD)
      hN_ref, cN_ref   (L, B, H)
      gx_buf           (T*B, 4H)     VMEM scratch: batched input projection
      seq_buf          (T*B, H)      VMEM scratch: inter-layer sequence (time-major)
    """
    L, H, T, B = num_layers, hidden_size, seq_len, batch

    x2d_ref, h0_ref, c0_ref = refs[0], refs[1], refs[2]
    wih_refs = refs[3:3 + L]
    whh_refs = refs[3 + L:3 + 2 * L]
    b_refs = refs[3 + 2 * L:3 + 3 * L]
    base = 3 + 3 * L
    w1_ref, b1_ref, w2_ref, b2_ref = refs[base:base + 4]
    out_ref, hN_ref, cN_ref = refs[base + 4:base + 7]
    gx_buf, seq_buf = refs[base + 7], refs[base + 8]

    layer_in = x2d_ref                    # (T*B, in_dim) time-major
    h = None
    for l in range(L):
        wih = whh = None
        wih = wih_refs[l][...]            # (in_dim, 4H)
        whh = whh_refs[l][...]            # (H, 4H)

        # One batched MXU matmul covering ALL T timesteps of this layer's
        # input projection; bias added once (no per-step broadcasts).
        # Independent of h/c -> fully off the recurrent critical path.
        gx_buf[...] = (
            jnp.dot(layer_in[...], wih, preferred_element_type=jnp.float32)
            + b_refs[l][...])

        h = h0_ref[l]                     # (B, H)
        c = c0_ref[l]
        last_layer = (l == L - 1)
        for t in range(T):
            gates = gx_buf[pl.ds(t * B, B), :] + jnp.dot(
                h, whh, preferred_element_type=jnp.float32)   # (B, 4H)
            # Full-vreg activations (2 EUP pushes), slice AFTER the nonlinearity.
            sig = jax.nn.sigmoid(gates)
            tnh = jnp.tanh(gates)
            i_g = sig[:, 0 * H:1 * H]
            f_g = sig[:, 1 * H:2 * H]
            o_g = sig[:, 3 * H:4 * H]
            g_g = tnh[:, 2 * H:3 * H]
            c = f_g * c + i_g * g_g
            h = o_g * jnp.tanh(c)
            if not last_layer:
                # Stage this layer's output sequence (time-major) for the next
                # layer's batched projection; dropout between layers is identity
                # in eval mode.
                seq_buf[pl.ds(t * B, B), :] = h
        hN_ref[l] = h                     # final states, written once per layer
        cN_ref[l] = c
        layer_in = seq_buf

    # Head on the last timestep of the top layer:
    #   dropout (id) -> BN2 -> fc1 -> relu -> dropout (id) -> BN3 -> fc2 -> sigmoid
    # BN2/BN3 (eval, running stats) are pre-folded into w1/b1 and w2/b2.
    z = jnp.dot(h, w1_ref[...], preferred_element_type=jnp.float32) + b1_ref[...]
    z = jnp.maximum(z, 0.0)
    z = jnp.dot(z, w2_ref[...], preferred_element_type=jnp.float32) + b2_ref[...]
    # Padded lanes >= output_size hold sigmoid(0)=0.5; the wrapper slices them off.
    out_ref[...] = jax.nn.sigmoid(z).astype(out_ref.dtype)


# ----------------------------------------------------------------------------
# Parameter construction (PyTorch-style raw params) + one-time preprocessing
# ----------------------------------------------------------------------------
def make_params(key, input_size, hidden_size, num_layers, output_size):
    H = hidden_size
    bound = 1.0 / jnp.sqrt(jnp.float32(H))
    params = {"lstm": []}
    for layer in range(num_layers):
        in_dim = input_size if layer == 0 else H
        key, k1, k2, k3, k4 = jax.random.split(key, 5)
        params["lstm"].append({
            "w_ih": jax.random.uniform(k1, (4 * H, in_dim), jnp.float32, -bound, bound),
            "w_hh": jax.random.uniform(k2, (4 * H, H), jnp.float32, -bound, bound),
            "b_ih": jax.random.uniform(k3, (4 * H,), jnp.float32, -bound, bound),
            "b_hh": jax.random.uniform(k4, (4 * H,), jnp.float32, -bound, bound),
        })
    key, k1, k2, k3, k4 = jax.random.split(key, 5)
    fb1 = 1.0 / jnp.sqrt(jnp.float32(H))
    fb2 = 1.0 / jnp.sqrt(jnp.float32(64))
    params["fc1_w"] = jax.random.uniform(k1, (64, H), jnp.float32, -fb1, fb1)
    params["fc1_b"] = jax.random.uniform(k2, (64,), jnp.float32, -fb1, fb1)
    params["fc2_w"] = jax.random.uniform(k3, (output_size, 64), jnp.float32, -fb2, fb2)
    params["fc2_b"] = jax.random.uniform(k4, (output_size,), jnp.float32, -fb2, fb2)
    # BatchNorm1d (fresh module): gamma=1, beta=0, running_mean=0, running_var=1
    eps = 1e-5
    for name, dim in (("bn2", H), ("bn3", 64)):
        gamma = jnp.ones((dim,), jnp.float32)
        beta = jnp.zeros((dim,), jnp.float32)
        rmean = jnp.zeros((dim,), jnp.float32)
        rvar = jnp.ones((dim,), jnp.float32)
        scale = gamma / jnp.sqrt(rvar + eps)
        shift = beta - rmean * scale
        params[name + "_scale"] = scale.reshape(1, dim)
        params[name + "_shift"] = shift.reshape(1, dim)
    # note: batch1d1 (60 channels) exists in __init__ but is unused in forward.
    return params


def prepare_params(params, out_pad=OUT_PAD):
    """One-time preprocessing, hoisted out of the per-call forward:
    transpose LSTM weights, combine biases, fold eval-mode BatchNorms into the
    fc layers, and zero-pad fc2's output lanes to a lane-dense width.
    (Eval mode only: if BN running stats change, regenerate this prep.)"""
    prep = {"wih": [], "whh": [], "bias": []}
    for lp in params["lstm"]:
        prep["wih"].append(jnp.asarray(lp["w_ih"].T, jnp.float32))
        prep["whh"].append(jnp.asarray(lp["w_hh"].T, jnp.float32))
        prep["bias"].append(
            jnp.asarray((lp["b_ih"] + lp["b_hh"]).reshape(1, -1), jnp.float32))

    # fc1(bn2(x)) = x @ W1' + b1'   with  W1' = diag(s2) @ W1^T
    s2 = params["bn2_scale"].reshape(-1)
    t2 = params["bn2_shift"].reshape(-1)
    w1_t = jnp.asarray(params["fc1_w"].T, jnp.float32)          # (H, 64)
    prep["w1"] = w1_t * s2[:, None]
    prep["b1"] = (t2 @ w1_t + params["fc1_b"]).reshape(1, -1)

    # fc2(bn3(r)) = r @ W2' + b2'   with  W2' = diag(s3) @ W2^T, lane-padded
    s3 = params["bn3_scale"].reshape(-1)
    t3 = params["bn3_shift"].reshape(-1)
    w2_t = jnp.asarray(params["fc2_w"].T, jnp.float32)          # (64, O)
    O = w2_t.shape[1]
    prep["w2"] = jnp.pad(w2_t * s3[:, None], ((0, 0), (0, out_pad - O)))
    prep["b2"] = jnp.pad((t3 @ w2_t + params["fc2_b"]).reshape(1, -1),
                         ((0, 0), (0, out_pad - O)))
    prep["output_size"] = O
    return prep


# ----------------------------------------------------------------------------
# Full module forward (single fused pallas_call)
# ----------------------------------------------------------------------------
def lstm_future_change_forward(prep, x, hidden):
    """x: (B, T, input_size) batch-first (PyTorch convention).
    hidden: (h0, c0), each (num_layers, B, H).
    Returns (out (B, output_size), (h_n, c_n))."""
    h0_all, c0_all = hidden
    B, T, I = x.shape
    L = len(prep["wih"])
    H = h0_all.shape[-1]

    # Single tiny fused transpose+reshape to time-major 2D (row = t*B + b) so
    # the kernel can issue ONE batched projection matmul per layer and read
    # contiguous (B, 4H) rows per step.  x is already f32 -> no extra cast copy.
    x2d = jnp.transpose(x, (1, 0, 2)).reshape(T * B, I).astype(jnp.float32)

    args = ([x2d, h0_all.astype(jnp.float32), c0_all.astype(jnp.float32)]
            + list(prep["wih"]) + list(prep["whh"]) + list(prep["bias"])
            + [prep["w1"], prep["b1"], prep["w2"], prep["b2"]])

    vmem = pltpu.MemorySpace.VMEM
    in_specs = [pl.BlockSpec(memory_space=vmem) for _ in args]
    out_specs = (pl.BlockSpec(memory_space=vmem),
                 pl.BlockSpec(memory_space=vmem),
                 pl.BlockSpec(memory_space=vmem))

    # Advisory cost estimate for the fused custom call.
    G = 4 * H
    in_dims = [I] + [H] * (L - 1)
    flops = sum(2 * T * B * d * G        # batched input projection
                + 2 * T * B * H * G      # recurrent matmuls (T steps)
                + 12 * T * B * H         # gate elementwise (rough)
                for d in in_dims)
    flops += 2 * B * H * 64 + 2 * B * 64 * OUT_PAD
    transcendentals = L * T * (2 * B * G + B * H) + B * OUT_PAD
    out_elems = B * OUT_PAD + 2 * L * B * H
    bytes_accessed = 4 * (sum(int(a.size) for a in args) + out_elems)
    cost = pl.CostEstimate(flops=int(flops),
                           transcendentals=int(transcendentals),
                           bytes_accessed=int(bytes_accessed))

    kernel = functools.partial(_fused_forward_kernel, num_layers=L,
                               hidden_size=H, seq_len=T, batch=B)

    out_pad, h_n, c_n = pl.pallas_call(
        kernel,
        out_shape=(
            jax.ShapeDtypeStruct((B, OUT_PAD), jnp.float32),
            jax.ShapeDtypeStruct((L, B, H), jnp.float32),
            jax.ShapeDtypeStruct((L, B, H), jnp.float32),
        ),
        in_specs=in_specs,
        out_specs=out_specs,
        scratch_shapes=[
            pltpu.VMEM((T * B, 4 * H), jnp.float32),   # gx staging (all steps of a layer)
            pltpu.VMEM((T * B, H), jnp.float32),       # inter-layer sequence (time-major)
        ],
        cost_estimate=cost,
    )(*args)
    return out_pad[:, :prep["output_size"]], (h_n, c_n)


# ----------------------------------------------------------------------------
# Pure-JAX reference (eval-mode PyTorch semantics) for correctness check
# ----------------------------------------------------------------------------
def reference_forward(params, x, hidden):
    h0_all, c0_all = hidden
    H = params["lstm"][0]["w_hh"].shape[1]
    seq = x.astype(jnp.float32)                                 # (B, T, I)
    hNs, cNs = [], []
    for l, lp in enumerate(params["lstm"]):
        h, c = h0_all[l], c0_all[l]
        outs = []
        for t in range(seq.shape[1]):
            gates = (seq[:, t, :] @ lp["w_ih"].T + h @ lp["w_hh"].T
                     + lp["b_ih"] + lp["b_hh"])
            i_g = jax.nn.sigmoid(gates[:, :H])
            f_g = jax.nn.sigmoid(gates[:, H:2 * H])
            g_g = jnp.tanh(gates[:, 2 * H:3 * H])
            o_g = jax.nn.sigmoid(gates[:, 3 * H:])
            c = f_g * c + i_g * g_g
            h = o_g * jnp.tanh(c)
            outs.append(h)
        seq = jnp.stack(outs, axis=1)
        hNs.append(h)
        cNs.append(c)
    z = seq[:, -1, :]
    z = z * params["bn2_scale"] + params["bn2_shift"]
    z = jnp.maximum(z @ params["fc1_w"].T + params["fc1_b"], 0.0)
    z = z * params["bn3_scale"] + params["bn3_shift"]
    out = jax.nn.sigmoid(z @ params["fc2_w"].T + params["fc2_b"])
    return out, (jnp.stack(hNs), jnp.stack(cNs))


if __name__ == "__main__":
    INPUT_SIZE = 16
    HIDDEN_SIZE = 32
    NUM_LAYERS = 2
    OUTPUT_SIZE = 2
    DROPOUT = 0.2   # eval mode -> identity
    B, T = 4, 8

    key = jax.random.PRNGKey(0)
    pkey, xkey = jax.random.split(key)
    params = make_params(pkey, INPUT_SIZE, HIDDEN_SIZE, NUM_LAYERS, OUTPUT_SIZE)
    prep = prepare_params(params)                               # one-time prep

    x = jax.random.normal(xkey, (B, T, INPUT_SIZE), jnp.float32)
    h0 = jnp.zeros((NUM_LAYERS, B, HIDDEN_SIZE), jnp.float32)   # init_hidden
    c0 = jnp.zeros((NUM_LAYERS, B, HIDDEN_SIZE), jnp.float32)

    fwd = jax.jit(functools.partial(lstm_future_change_forward, prep))
    out, (h_n, c_n) = fwd(x, (h0, c0))
    jax.block_until_ready((out, h_n, c_n))

    assert out.shape == (B, OUTPUT_SIZE)
    assert h_n.shape == (NUM_LAYERS, B, HIDDEN_SIZE)
    assert c_n.shape == (NUM_LAYERS, B, HIDDEN_SIZE)
    assert bool(jnp.all(jnp.isfinite(out)))

    ref_out, (ref_h, ref_c) = reference_forward(params, x, (h0, c0))
    assert float(jnp.max(jnp.abs(out - ref_out))) < 1e-3
    assert float(jnp.max(jnp.abs(h_n - ref_h))) < 1e-3
    assert float(jnp.max(jnp.abs(c_n - ref_c))) < 1e-3

    print("KERNEL_OK")
</pallas_src>

<mosaic_0001>
module attributes {stable_mosaic.version = 11 : i64} {
  func.func @_fused_forward_kernel(%arg0: memref<32x16xf32, #tpu.memory_space<vmem>>, %arg1: memref<2x4x32xf32, #tpu.memory_space<vmem>>, %arg2: memref<2x4x32xf32, #tpu.memory_space<vmem>>, %arg3: memref<16x128xf32, #tpu.memory_space<vmem>>, %arg4: memref<32x128xf32, #tpu.memory_space<vmem>>, %arg5: memref<32x128xf32, #tpu.memory_space<vmem>>, %arg6: memref<32x128xf32, #tpu.memory_space<vmem>>, %arg7: memref<1x128xf32, #tpu.memory_space<vmem>>, %arg8: memref<1x128xf32, #tpu.memory_space<vmem>>, %arg9: memref<32x64xf32, #tpu.memory_space<vmem>>, %arg10: memref<1x64xf32, #tpu.memory_space<vmem>>, %arg11: memref<64x128xf32, #tpu.memory_space<vmem>>, %arg12: memref<1x128xf32, #tpu.memory_space<vmem>>, %arg13: memref<4x128xf32, #tpu.memory_space<vmem>>, %arg14: memref<2x4x32xf32, #tpu.memory_space<vmem>>, %arg15: memref<2x4x32xf32, #tpu.memory_space<vmem>>, %arg16: memref<32x128xf32, #tpu.memory_space<vmem>>, %arg17: memref<32x32xf32, #tpu.memory_space<vmem>>) attributes {dimension_semantics = [], scalar_prefetch = 0 : i64, scratch_operands = 2 : i64, tpu.core_type = #tpu.core_type<tc>} {
    %c0 = arith.constant 0 : index
    %c0_0 = arith.constant 0 : index
    %0 = vector.load %arg3[%c0, %c0_0] : memref<16x128xf32, #tpu.memory_space<vmem>>, vector<16x128xf32>
    %c0_1 = arith.constant 0 : index
    %c0_2 = arith.constant 0 : index
    %1 = vector.load %arg5[%c0_1, %c0_2] : memref<32x128xf32, #tpu.memory_space<vmem>>, vector<32x128xf32>
    %c0_3 = arith.constant 0 : index
    %c0_4 = arith.constant 0 : index
    %2 = vector.load %arg0[%c0_3, %c0_4] : memref<32x16xf32, #tpu.memory_space<vmem>>, vector<32x16xf32>
    %cst = arith.constant dense<0.000000e+00> : vector<32x128xf32>
    %3 = tpu.matmul %2, %0, %cst {dimension_numbers = #tpu.dot_dimension_numbers<[1], [0], [0], [1], [0, 0, 1, 1], [], []>} : vector<32x16xf32>, vector<16x128xf32>, vector<32x128xf32> -> vector<32x128xf32>
    %c0_5 = arith.constant 0 : index
    %c0_6 = arith.constant 0 : index
    %4 = vector.load %arg7[%c0_5, %c0_6] : memref<1x128xf32, #tpu.memory_space<vmem>>, vector<1x128xf32>
    %5 = vector.broadcast %4 : vector<1x128xf32> to vector<32x128xf32>
    %6 = arith.addf %3, %5 : vector<32x128xf32>
    %c0_7 = arith.constant 0 : index
    %c0_8 = arith.constant 0 : index
    %7 = vector.load %arg16[%c0_7, %c0_8] : memref<32x128xf32, #tpu.memory_space<vmem>>, vector<32x128xf32>
    tpu.vector_store %arg16[%c0_7, %c0_8], %6 {strides = array<i32>} : memref<32x128xf32, #tpu.memory_space<vmem>>, vector<32x128xf32>,
    %c0_9 = arith.constant 0 : index
    %c0_10 = arith.constant 0 : index
    %c0_11 = arith.constant 0 : index
    %8 = vector.load %arg1[%c0_9, %c0_10, %c0_11] : memref<2x4x32xf32, #tpu.memory_space<vmem>>, vector<1x4x32xf32>
    %9 = vector.shape_cast %8 : vector<1x4x32xf32> to vector<4x32xf32>
    %c0_12 = arith.constant 0 : index
    %c0_13 = arith.constant 0 : index
    %c0_14 = arith.constant 0 : index
    %10 = vector.load %arg2[%c0_12, %c0_13, %c0_14] : memref<2x4x32xf32, #tpu.memory_space<vmem>>, vector<1x4x32xf32>
    %11 = vector.shape_cast %10 : vector<1x4x32xf32> to vector<4x32xf32>
    %c0_15 = arith.constant 0 : index
    %c0_16 = arith.constant 0 : index
    %12 = vector.load %arg16[%c0_15, %c0_16] : memref<32x128xf32, #tpu.memory_space<vmem>>, vector<4x128xf32>
    %cst_17 = arith.constant dense<0.000000e+00> : vector<4x128xf32>
    %13 = tpu.matmul %9, %1, %cst_17 {dimension_numbers = #tpu.dot_dimension_numbers<[1], [0], [0], [1], [0, 0, 1, 1], [], []>} : vector<4x32xf32>, vector<32x128xf32>, vector<4x128xf32> -> vector<4x128xf32>
    %14 = arith.addf %12, %13 : vector<4x128xf32>
    %15 = arith.negf %14 : vector<4x128xf32>
    %16 = math.exp %15 : vector<4x128xf32>
    %cst_18 = arith.constant 1.000000e+00 : f32
    %17 = vector.broadcast %cst_18 : f32 to vector<4x128xf32>
    %18 = arith.addf %17, %16 : vector<4x128xf32>
    %19 = arith.divf %17, %18 : vector<4x128xf32>
    %20 = math.tanh %14 : vector<4x128xf32>
    %21 = vector.extract_strided_slice %19 {offsets = [0, 0], sizes = [4, 32], strides = [1, 1]} : vector<4x128xf32> to vector<4x32xf32>
    %22 = vector.extract_strided_slice %19 {offsets = [0, 32], sizes = [4, 32], strides = [1, 1]} : vector<4x128xf32> to vector<4x32xf32>
    %23 = vector.extract_strided_slice %19 {offsets = [0, 96], sizes = [4, 32], strides = [1, 1]} : vector<4x128xf32> to vector<4x32xf32>
    %24 = vector.extract_strided_slice %20 {offsets = [0, 64], sizes = [4, 32], strides = [1, 1]} : vector<4x128xf32> to vector<4x32xf32>
    %25 = arith.mulf %22, %11 : vector<4x32xf32>
    %26 = arith.mulf %21, %24 : vector<4x32xf32>
    %27 = arith.addf %25, %26 : vector<4x32xf32>
    %28 = math.tanh %27 : vector<4x32xf32>
    %29 = arith.mulf %23, %28 : vector<4x32xf32>
    %c0_19 = arith.constant 0 : index
    %c0_20 = arith.constant 0 : index
    %30 = vector.load %arg17[%c0_19, %c0_20] : memref<32x32xf32, #tpu.memory_space<vmem>>, vector<4x32xf32>
    tpu.vector_store %arg17[%c0_19, %c0_20], %29 {strides = array<i32>} : memref<32x32xf32, #tpu.memory_space<vmem>>, vector<4x32xf32>,
    %c4 = arith.constant 4 : index
    %c0_21 = arith.constant 0 : index
    %31 = vector.load %arg16[%c4, %c0_21] : memref<32x128xf32, #tpu.memory_space<vmem>>, vector<4x128xf32>
    %cst_22 = arith.constant dense<0.000000e+00> : vector<4x128xf32>
    %32 = tpu.matmul %29, %1, %cst_22 {dimension_numbers = #tpu.dot_dimension_numbers<[1], [0], [0], [1], [0, 0, 1, 1], [], []>} : vector<4x32xf32>, vector<32x128xf32>, vector<4x128xf32> -> vector<4x128xf32>
    %33 = arith.addf %31, %32 : vector<4x128xf32>
    %34 = arith.negf %33 : vector<4x128xf32>
    %35 = math.exp %34 : vector<4x128xf32>
    %cst_23 = arith.constant 1.000000e+00 : f32
    %36 = vector.broadcast %cst_23 : f32 to vector<4x128xf32>
    %37 = arith.addf %36, %35 : vector<4x128xf32>
    %38 = arith.divf %36, %37 : vector<4x128xf32>
    %39 = math.tanh %33 : vector<4x128xf32>
    %40 = vector.extract_strided_slice %38 {offsets = [0, 0], sizes = [4, 32], strides = [1, 1]} : vector<4x128xf32> to vector<4x32xf32>
    %41 = vector.extract_strided_slice %38 {offsets = [0, 32], sizes = [4, 32], strides = [1, 1]} : vector<4x128xf32> to vector<4x32xf32>
    %42 = vector.extract_strided_slice %38 {offsets = [0, 96], sizes = [4, 32], strides = [1, 1]} : vector<4x128xf32> to vector<4x32xf32>
    %43 = vector.extract_strided_slice %39 {offsets = [0, 64], sizes = [4, 32], strides = [1, 1]} : vector<4x128xf32> to vector<4x32xf32>
    %44 = arith.mulf %41, %27 : vector<4x32xf32>
    %45 = arith.mulf %40, %43 : vector<4x32xf32>
    %46 = arith.addf %44, %45 : vector<4x32xf32>
    %47 = math.tanh %46 : vector<4x32xf32>
    %48 = arith.mulf %42, %47 : vector<4x32xf32>
    %c4_24 = arith.constant 4 : index
    %c0_25 = arith.constant 0 : index
    %49 = vector.load %arg17[%c4_24, %c0_25] : memref<32x32xf32, #tpu.memory_space<vmem>>, vector<4x32xf32>
    tpu.vector_store %arg17[%c4_24, %c0_25], %48 {strides = array<i32>} : memref<32x32xf32, #tpu.memory_space<vmem>>, vector<4x32xf32>,
    %c8 = arith.constant 8 : index
    %c0_26 = arith.constant 0 : index
    %50 = vector.load %arg16[%c8, %c0_26] : memref<32x128xf32, #tpu.memory_space<vmem>>, vector<4x128xf32>
    %cst_27 = arith.constant dense<0.000000e+00> : vector<4x128xf32>
    %51 = tpu.matmul %48, %1, %cst_27 {dimension_numbers = #tpu.dot_dimension_numbers<[1], [0], [0], [1], [0, 0, 1, 1], [], []>} : vector<4x32xf32>, vector<32x128xf32>, vector<4x128xf32> -> vector<4x128xf32>
    %52 = arith.addf %50, %51 : vector<4x128xf32>
    %53 = arith.negf %52 : vector<4x128xf32>
    %54 = math.exp %53 : vector<4x128xf32>
    %cst_28 = arith.constant 1.000000e+00 : f32
    %55 = vector.broadcast %cst_28 : f32 to vector<4x128xf32>
    %56 = arith.addf %55, %54 : vector<4x128xf32>
    %57 = arith.divf %55, %56 : vector<4x128xf32>
    %58 = math.tanh %52 : vector<4x128xf32>
    %59 = vector.extract_strided_slice %57 {offsets = [0, 0], sizes = [4, 32], strides = [1, 1]} : vector<4x128xf32> to vector<4x32xf32>
    %60 = vector.extract_strided_slice %57 {offsets = [0, 32], sizes = [4, 32], strides = [1, 1]} : vector<4x128xf32> to vector<4x32xf32>
    %61 = vector.extract_strided_slice %57 {offsets = [0, 96], sizes = [4, 32], strides = [1, 1]} : vector<4x128xf32> to vector<4x32xf32>
    %62 = vector.extract_strided_slice %58 {offsets = [0, 64], sizes = [4, 32], strides = [1, 1]} : vector<4x128xf32> to vector<4x32xf32>
    %63 = arith.mulf %60, %46 : vector<4x32xf32>
    %64 = arith.mulf %59, %62 : vector<4x32xf32>
    %65 = arith.addf %63, %64 : vector<4x32xf32>
    %66 = math.tanh %65 : vector<4x32xf32>
    %67 = arith.mulf %61, %66 : vector<4x32xf32>
    %c8_29 = arith.constant 8 : index
    %c0_30 = arith.constant 0 : index
    %68 = vector.load %arg17[%c8_29, %c0_30] : memref<32x32xf32, #tpu.memory_space<vmem>>, vector<4x32xf32>
    tpu.vector_store %arg17[%c8_29, %c0_30], %67 {strides = array<i32>} : memref<32x32xf32, #tpu.memory_space<vmem>>, vector<4x32xf32>,
    %c12 = arith.constant 12 : index
    %c0_31 = arith.constant 0 : index
    %69 = vector.load %arg16[%c12, %c0_31] : memref<32x128xf32, #tpu.memory_space<vmem>>, vector<4x128xf32>
    %cst_32 = arith.constant dense<0.000000e+00> : vector<4x128xf32>
    %70 = tpu.matmul %67, %1, %cst_32 {dimension_numbers = #tpu.dot_dimension_numbers<[1], [0], [0], [1], [0, 0, 1, 1], [], []>} : vector<4x32xf32>, vector<32x128xf32>, vector<4x128xf32> -> vector<4x128xf32>
    %71 = arith.addf %69, %70 : vector<4x128xf32>
    %72 = arith.negf %71 : vector<4x128xf32>
    %73 = math.exp %72 : vector<4x128xf32>
    %cst_33 = arith.constant 1.000000e+00 : f32
    %74 = vector.broadcast %cst_33 : f32 to vector<4x128xf32>
    %75 = arith.addf %74, %73 : vector<4x128xf32>
    %76 = arith.divf %74, %75 : vector<4x128xf32>
    %77 = math.tanh %71 : vector<4x128xf32>
    %78 = vector.extract_strided_slice %76 {offsets = [0, 0], sizes = [4, 32], strides = [1, 1]} : vector<4x128xf32> to vector<4x32xf32>
    %79 = vector.extract_strided_slice %76 {offsets = [0, 32], sizes = [4, 32], strides = [1, 1]} : vector<4x128xf32> to vector<4x32xf32>
    %80 = vector.extract_strided_slice %76 {offsets = [0, 96], sizes = [4, 32], strides = [1, 1]} : vector<4x128xf32> to vector<4x32xf32>
    %81 = vector.extract_strided_slice %77 {offsets = [0, 64], sizes = [4, 32], strides = [1, 1]} : vector<4x128xf32> to vector<4x32xf32>
    %82 = arith.mulf %79, %65 : vector<4x32xf32>
    %83 = arith.mulf %78, %81 : vector<4x32xf32>
    %84 = arith.addf %82, %83 : vector<4x32xf32>
    %85 = math.tanh %84 : vector<4x32xf32>
    %86 = arith.mulf %80, %85 : vector<4x32xf32>
    %c12_34 = arith.constant 12 : index
    %c0_35 = arith.constant 0 : index
    %87 = vector.load %arg17[%c12_34, %c0_35] : memref<32x32xf32, #tpu.memory_space<vmem>>, vector<4x32xf32>
    tpu.vector_store %arg17[%c12_34, %c0_35], %86 {strides = array<i32>} : memref<32x32xf32, #tpu.memory_space<vmem>>, vector<4x32xf32>,
    %c16 = arith.constant 16 : index
    %c0_36 = arith.constant 0 : index
    %88 = vector.load %arg16[%c16, %c0_36] : memref<32x128xf32, #tpu.memory_space<vmem>>, vector<4x128xf32>
    %cst_37 = arith.constant dense<0.000000e+00> : vector<4x128xf32>
    %89 = tpu.matmul %86, %1, %cst_37 {dimension_numbers = #tpu.dot_dimension_numbers<[1], [0], [0], [1], [0, 0, 1, 1], [], []>} : vector<4x32xf32>, vector<32x128xf32>, vector<4x128xf32> -> vector<4x128xf32>
    %90 = arith.addf %88, %89 : vector<4x128xf32>
    %91 = arith.negf %90 : vector<4x128xf32>
    %92 = math.exp %91 : vector<4x128xf32>
    %cst_38 = arith.constant 1.000000e+00 : f32
    %93 = vector.broadcast %cst_38 : f32 to vector<4x128xf32>
    %94 = arith.addf %93, %92 : vector<4x128xf32>
    %95 = arith.divf %93, %94 : vector<4x128xf32>
    %96 = math.tanh %90 : vector<4x128xf32>
    %97 = vector.extract_strided_slice %95 {offsets = [0, 0], sizes = [4, 32], strides = [1, 1]} : vector<4x128xf32> to vector<4x32xf32>
    %98 = vector.extract_strided_slice %95 {offsets = [0, 32], sizes = [4, 32], strides = [1, 1]} : vector<4x128xf32> to vector<4x32xf32>
    %99 = vector.extract_strided_slice %95 {offsets = [0, 96], sizes = [4, 32], strides = [1, 1]} : vector<4x128xf32> to vector<4x32xf32>
    %100 = vector.extract_strided_slice %96 {offsets = [0, 64], sizes = [4, 32], strides = [1, 1]} : vector<4x128xf32> to vector<4x32xf32>
    %101 = arith.mulf %98, %84 : vector<4x32xf32>
    %102 = arith.mulf %97, %100 : vector<4x32xf32>
    %103 = arith.addf %101, %102 : vector<4x32xf32>
    %104 = math.tanh %103 : vector<4x32xf32>
    %105 = arith.mulf %99, %104 : vector<4x32xf32>
    %c16_39 = arith.constant 16 : index
    %c0_40 = arith.constant 0 : index
    %106 = vector.load %arg17[%c16_39, %c0_40] : memref<32x32xf32, #tpu.memory_space<vmem>>, vector<4x32xf32>
    tpu.vector_store %arg17[%c16_39, %c0_40], %105 {strides = array<i32>} : memref<32x32xf32, #tpu.memory_space<vmem>>, vector<4x32xf32>,
    %c20 = arith.constant 20 : index
    %c0_41 = arith.constant 0 : index
    %107 = vector.load %arg16[%c20, %c0_41] : memref<32x128xf32, #tpu.memory_space<vmem>>, vector<4x128xf32>
    %cst_42 = arith.constant dense<0.000000e+00> : vector<4x128xf32>
    %108 = tpu.matmul %105, %1, %cst_42 {dimension_numbers = #tpu.dot_dimension_numbers<[1], [0], [0], [1], [0, 0, 1, 1], [], []>} : vector<4x32xf32>, vector<32x128xf32>, vector<4x128xf32> -> vector<4x128xf32>
    %109 = arith.addf %107, %108 : vector<4x128xf32>
    %110 = arith.negf %109 : vector<4x128xf32>
    %111 = math.exp %110 : vector<4x128xf32>
    %cst_43 = arith.constant 1.000000e+00 : f32
    %112 = vector.broadcast %cst_43 : f32 to vector<4x128xf32>
    %113 = arith.addf %112, %111 : vector<4x128xf32>
    %114 = arith.divf %112, %113 : vector<4x128xf32>
    %115 = math.tanh %109 : vector<4x128xf32>
    %116 = vector.extract_strided_slice %114 {offsets = [0, 0], sizes = [4, 32], strides = [1, 1]} : vector<4x128xf32> to vector<4x32xf32>
    %117 = vector.extract_strided_slice %114 {offsets = [0, 32], sizes = [4, 32], strides = [1, 1]} : vector<4x128xf32> to vector<4x32xf32>
    %118 = vector.extract_strided_slice %114 {offsets = [0, 96], sizes = [4, 32], strides = [1, 1]} : vector<4x128xf32> to vector<4x32xf32>
    %119 = vector.extract_strided_slice %115 {offsets = [0, 64], sizes = [4, 32], strides = [1, 1]} : vector<4x128xf32> to vector<4x32xf32>
    %120 = arith.mulf %117, %103 : vector<4x32xf32>
    %121 = arith.mulf %116, %119 : vector<4x32xf32>
    %122 = arith.addf %120, %121 : vector<4x32xf32>
    %123 = math.tanh %122 : vector<4x32xf32>
    %124 = arith.mulf %118, %123 : vector<4x32xf32>
    %c20_44 = arith.constant 20 : index
    %c0_45 = arith.constant 0 : index
    %125 = vector.load %arg17[%c20_44, %c0_45] : memref<32x32xf32, #tpu.memory_space<vmem>>, vector<4x32xf32>
    tpu.vector_store %arg17[%c20_44, %c0_45], %124 {strides = array<i32>} : memref<32x32xf32, #tpu.memory_space<vmem>>, vector<4x32xf32>,
    %c24 = arith.constant 24 : index
    %c0_46 = arith.constant 0 : index
    %126 = vector.load %arg16[%c24, %c0_46] : memref<32x128xf32, #tpu.memory_space<vmem>>, vector<4x128xf32>
    %cst_47 = arith.constant dense<0.000000e+00> : vector<4x128xf32>
    %127 = tpu.matmul %124, %1, %cst_47 {dimension_numbers = #tpu.dot_dimension_numbers<[1], [0], [0], [1], [0, 0, 1, 1], [], []>} : vector<4x32xf32>, vector<32x128xf32>, vector<4x128xf32> -> vector<4x128xf32>
    %128 = arith.addf %126, %127 : vector<4x128xf32>
    %129 = arith.negf %128 : vector<4x128xf32>
    %130 = math.exp %129 : vector<4x128xf32>
    %cst_48 = arith.constant 1.000000e+00 : f32
    %131 = vector.broadcast %cst_48 : f32 to vector<4x128xf32>
    %132 = arith.addf %131, %130 : vector<4x128xf32>
    %133 = arith.divf %131, %132 : vector<4x128xf32>
    %134 = math.tanh %128 : vector<4x128xf32>
    %135 = vector.extract_strided_slice %133 {offsets = [0, 0], sizes = [4, 32], strides = [1, 1]} : vector<4x128xf32> to vector<4x32xf32>
    %136 = vector.extract_strided_slice %133 {offsets = [0, 32], sizes = [4, 32], strides = [1, 1]} : vector<4x128xf32> to vector<4x32xf32>
    %137 = vector.extract_strided_slice %133 {offsets = [0, 96], sizes = [4, 32], strides = [1, 1]} : vector<4x128xf32> to vector<4x32xf32>
    %138 = vector.extract_strided_slice %134 {offsets = [0, 64], sizes = [4, 32], strides = [1, 1]} : vector<4x128xf32> to vector<4x32xf32>
    %139 = arith.mulf %136, %122 : vector<4x32xf32>
    %140 = arith.mulf %135, %138 : vector<4x32xf32>
    %141 = arith.addf %139, %140 : vector<4x32xf32>
    %142 = math.tanh %141 : vector<4x32xf32>
    %143 = arith.mulf %137, %142 : vector<4x32xf32>
    %c24_49 = arith.constant 24 : index
    %c0_50 = arith.constant 0 : index
    %144 = vector.load %arg17[%c24_49, %c0_50] : memref<32x32xf32, #tpu.memory_space<vmem>>, vector<4x32xf32>
    tpu.vector_store %arg17[%c24_49, %c0_50], %143 {strides = array<i32>} : memref<32x32xf32, #tpu.memory_space<vmem>>, vector<4x32xf32>,
    %c28 = arith.constant 28 : index
    %c0_51 = arith.constant 0 : index
    %145 = vector.load %arg16[%c28, %c0_51] : memref<32x128xf32, #tpu.memory_space<vmem>>, vector<4x128xf32>
    %cst_52 = arith.constant dense<0.000000e+00> : vector<4x128xf32>
    %146 = tpu.matmul %143, %1, %cst_52 {dimension_numbers = #tpu.dot_dimension_numbers<[1], [0], [0], [1], [0, 0, 1, 1], [], []>} : vector<4x32xf32>, vector<32x128xf32>, vector<4x128xf32> -> vector<4x128xf32>
    %147 = arith.addf %145, %146 : vector<4x128xf32>
    %148 = arith.negf %147 : vector<4x128xf32>
    %149 = math.exp %148 : vector<4x128xf32>
    %cst_53 = arith.constant 1.000000e+00 : f32
    %150 = vector.broadcast %cst_53 : f32 to vector<4x128xf32>
    %151 = arith.addf %150, %149 : vector<4x128xf32>
    %152 = arith.divf %150, %151 : vector<4x128xf32>
    %153 = math.tanh %147 : vector<4x128xf32>
    %154 = vector.extract_strided_slice %152 {offsets = [0, 0], sizes = [4, 32], strides = [1, 1]} : vector<4x128xf32> to vector<4x32xf32>
    %155 = vector.extract_strided_slice %152 {offsets = [0, 32], sizes = [4, 32], strides = [1, 1]} : vector<4x128xf32> to vector<4x32xf32>
    %156 = vector.extract_strided_slice %152 {offsets = [0, 96], sizes = [4, 32], strides = [1, 1]} : vector<4x128xf32> to vector<4x32xf32>
    %157 = vector.extract_strided_slice %153 {offsets = [0, 64], sizes = [4, 32], strides = [1, 1]} : vector<4x128xf32> to vector<4x32xf32>
    %158 = arith.mulf %155, %141 : vector<4x32xf32>
    %159 = arith.mulf %154, %157 : vector<4x32xf32>
    %160 = arith.addf %158, %159 : vector<4x32xf32>
    %161 = math.tanh %160 : vector<4x32xf32>
    %162 = arith.mulf %156, %161 : vector<4x32xf32>
    %c28_54 = arith.constant 28 : index
    %c0_55 = arith.constant 0 : index
    %163 = vector.load %arg17[%c28_54, %c0_55] : memref<32x32xf32, #tpu.memory_space<vmem>>, vector<4x32xf32>
    tpu.vector_store %arg17[%c28_54, %c0_55], %162 {strides = array<i32>} : memref<32x32xf32, #tpu.memory_space<vmem>>, vector<4x32xf32>,
    %c0_56 = arith.constant 0 : index
    %c0_57 = arith.constant 0 : index
    %c0_58 = arith.constant 0 : index
    %164 = vector.load %arg14[%c0_56, %c0_57, %c0_58] : memref<2x4x32xf32, #tpu.memory_space<vmem>>, vector<1x4x32xf32>
    %165 = vector.shape_cast %164 : vector<1x4x32xf32> to vector<4x32xf32>
    %166 = vector.shape_cast %162 : vector<4x32xf32> to vector<1x4x32xf32>
    tpu.vector_store %arg14[%c0_56, %c0_57, %c0_58], %166 {strides = array<i32>} : memref<2x4x32xf32, #tpu.memory_space<vmem>>, vector<1x4x32xf32>,
    %c0_59 = arith.constant 0 : index
    %c0_60 = arith.constant 0 : index
    %c0_61 = arith.constant 0 : index
    %167 = vector.load %arg15[%c0_59, %c0_60, %c0_61] : memref<2x4x32xf32, #tpu.memory_space<vmem>>, vector<1x4x32xf32>
    %168 = vector.shape_cast %167 : vector<1x4x32xf32> to vector<4x32xf32>
    %169 = vector.shape_cast %160 : vector<4x32xf32> to vector<1x4x32xf32>
    tpu.vector_store %arg15[%c0_59, %c0_60, %c0_61], %169 {strides = array<i32>} : memref<2x4x32xf32, #tpu.memory_space<vmem>>, vector<1x4x32xf32>,
    %c0_62 = arith.constant 0 : index
    %c0_63 = arith.constant 0 : index
    %170 = vector.load %arg4[%c0_62, %c0_63] : memref<32x128xf32, #tpu.memory_space<vmem>>, vector<32x128xf32>
    %c0_64 = arith.constant 0 : index
    %c0_65 = arith.constant 0 : index
    %171 = vector.load %arg6[%c0_64, %c0_65] : memref<32x128xf32, #tpu.memory_space<vmem>>, vector<32x128xf32>
    %c0_66 = arith.constant 0 : index
    %c0_67 = arith.constant 0 : index
    %172 = vector.load %arg17[%c0_66, %c0_67] : memref<32x32xf32, #tpu.memory_space<vmem>>, vector<32x32xf32>
    %cst_68 = arith.constant dense<0.000000e+00> : vector<32x128xf32>
    %173 = tpu.matmul %172, %170, %cst_68 {dimension_numbers = #tpu.dot_dimension_numbers<[1], [0], [0], [1], [0, 0, 1, 1], [], []>} : vector<32x32xf32>, vector<32x128xf32>, vector<32x128xf32> -> vector<32x128xf32>
    %c0_69 = arith.constant 0 : index
    %c0_70 = arith.constant 0 : index
    %174 = vector.load %arg8[%c0_69, %c0_70] : memref<1x128xf32, #tpu.memory_space<vmem>>, vector<1x128xf32>
    %175 = vector.broadcast %174 : vector<1x128xf32> to vector<32x128xf32>
    %176 = arith.addf %173, %175 : vector<32x128xf32>
    %c0_71 = arith.constant 0 : index
    %c0_72 = arith.constant 0 : index
    %177 = vector.load %arg16[%c0_71, %c0_72] : memref<32x128xf32, #tpu.memory_space<vmem>>, vector<32x128xf32>
    tpu.vector_store %arg16[%c0_71, %c0_72], %176 {strides = array<i32>} : memref<32x128xf32, #tpu.memory_space<vmem>>, vector<32x128xf32>,
    %c1 = arith.constant 1 : index
    %c0_73 = arith.constant 0 : index
    %c0_74 = arith.constant 0 : index
    %178 = vector.load %arg1[%c1, %c0_73, %c0_74] : memref<2x4x32xf32, #tpu.memory_space<vmem>>, vector<1x4x32xf32>
    %179 = vector.shape_cast %178 : vector<1x4x32xf32> to vector<4x32xf32>
    %c1_75 = arith.constant 1 : index
    %c0_76 = arith.constant 0 : index
    %c0_77 = arith.constant 0 : index
    %180 = vector.load %arg2[%c1_75, %c0_76, %c0_77] : memref<2x4x32xf32, #tpu.memory_space<vmem>>, vector<1x4x32xf32>
    %181 = vector.shape_cast %180 : vector<1x4x32xf32> to vector<4x32xf32>
    %c0_78 = arith.constant 0 : index
    %c0_79 = arith.constant 0 : index
    %182 = vector.load %arg16[%c0_78, %c0_79] : memref<32x128xf32, #tpu.memory_space<vmem>>, vector<4x128xf32>
    %cst_80 = arith.constant dense<0.000000e+00> : vector<4x128xf32>
    %183 = tpu.matmul %179, %171, %cst_80 {dimension_numbers = #tpu.dot_dimension_numbers<[1], [0], [0], [1], [0, 0, 1, 1], [], []>} : vector<4x32xf32>, vector<32x128xf32>, vector<4x128xf32> -> vector<4x128xf32>
    %184 = arith.addf %182, %183 : vector<4x128xf32>
    %185 = arith.negf %184 : vector<4x128xf32>
    %186 = math.exp %185 : vector<4x128xf32>
    %cst_81 = arith.constant 1.000000e+00 : f32
    %187 = vector.broadcast %cst_81 : f32 to vector<4x128xf32>
    %188 = arith.addf %187, %186 : vector<4x128xf32>
    %189 = arith.divf %187, %188 : vector<4x128xf32>
    %190 = math.tanh %184 : vector<4x128xf32>
    %191 = vector.extract_strided_slice %189 {offsets = [0, 0], sizes = [4, 32], strides = [1, 1]} : vector<4x128xf32> to vector<4x32xf32>
    %192 = vector.extract_strided_slice %189 {offsets = [0, 32], sizes = [4, 32], strides = [1, 1]} : vector<4x128xf32> to vector<4x32xf32>
    %193 = vector.extract_strided_slice %189 {offsets = [0, 96], sizes = [4, 32], strides = [1, 1]} : vector<4x128xf32> to vector<4x32xf32>
    %194 = vector.extract_strided_slice %190 {offsets = [0, 64], sizes = [4, 32], strides = [1, 1]} : vector<4x128xf32> to vector<4x32xf32>
    %195 = arith.mulf %192, %181 : vector<4x32xf32>
    %196 = arith.mulf %191, %194 : vector<4x32xf32>
    %197 = arith.addf %195, %196 : vector<4x32xf32>
    %198 = math.tanh %197 : vector<4x32xf32>
    %199 = arith.mulf %193, %198 : vector<4x32xf32>
    %c4_82 = arith.constant 4 : index
    %c0_83 = arith.constant 0 : index
    %200 = vector.load %arg16[%c4_82, %c0_83] : memref<32x128xf32, #tpu.memory_space<vmem>>, vector<4x128xf32>
    %cst_84 = arith.constant dense<0.000000e+00> : vector<4x128xf32>
    %201 = tpu.matmul %199, %171, %cst_84 {dimension_numbers = #tpu.dot_dimension_numbers<[1], [0], [0], [1], [0, 0, 1, 1], [], []>} : vector<4x32xf32>, vector<32x128xf32>, vector<4x128xf32> -> vector<4x128xf32>
    %202 = arith.addf %200, %201 : vector<4x128xf32>
    %203 = arith.negf %202 : vector<4x128xf32>
    %204 = math.exp %203 : vector<4x128xf32>
    %cst_85 = arith.constant 1.000000e+00 : f32
    %205 = vector.broadcast %cst_85 : f32 to vector<4x128xf32>
    %206 = arith.addf %205, %204 : vector<4x128xf32>
    %207 = arith.divf %205, %206 : vector<4x128xf32>
    %208 = math.tanh %202 : vector<4x128xf32>
    %209 = vector.extract_strided_slice %207 {offsets = [0, 0], sizes = [4, 32], strides = [1, 1]} : vector<4x128xf32> to vector<4x32xf32>
    %210 = vector.extract_strided_slice %207 {offsets = [0, 32], sizes = [4, 32], strides = [1, 1]} : vector<4x128xf32> to vector<4x32xf32>
    %211 = vector.extract_strided_slice %207 {offsets = [0, 96], sizes = [4, 32], strides = [1, 1]} : vector<4x128xf32> to vector<4x32xf32>
    %212 = vector.extract_strided_slice %208 {offsets = [0, 64], sizes = [4, 32], strides = [1, 1]} : vector<4x128xf32> to vector<4x32xf32>
    %213 = arith.mulf %210, %197 : vector<4x32xf32>
    %214 = arith.mulf %209, %212 : vector<4x32xf32>
    %215 = arith.addf %213, %214 : vector<4x32xf32>
    %216 = math.tanh %215 : vector<4x32xf32>
    %217 = arith.mulf %211, %216 : vector<4x32xf32>
    %c8_86 = arith.constant 8 : index
    %c0_87 = arith.constant 0 : index
    %218 = vector.load %arg16[%c8_86, %c0_87] : memref<32x128xf32, #tpu.memory_space<vmem>>, vector<4x128xf32>
    %cst_88 = arith.constant dense<0.000000e+00> : vector<4x128xf32>
    %219 = tpu.matmul %217, %171, %cst_88 {dimension_numbers = #tpu.dot_dimension_numbers<[1], [0], [0], [1], [0, 0, 1, 1], [], []>} : vector<4x32xf32>, vector<32x128xf32>, vector<4x128xf32> -> vector<4x128xf32>
    %220 = arith.addf %218, %219 : vector<4x128xf32>
    %221 = arith.negf %220 : vector<4x128xf32>
    %222 = math.exp %221 : vector<4x128xf32>
    %cst_89 = arith.constant 1.000000e+00 : f32
    %223 = vector.broadcast %cst_89 : f32 to vector<4x128xf32>
    %224 = arith.addf %223, %222 : vector<4x128xf32>
    %225 = arith.divf %223, %224 : vector<4x128xf32>
    %226 = math.tanh %220 : vector<4x128xf32>
    %227 = vector.extract_strided_slice %225 {offsets = [0, 0], sizes = [4, 32], strides = [1, 1]} : vector<4x128xf32> to vector<4x32xf32>
    %228 = vector.extract_strided_slice %225 {offsets = [0, 32], sizes = [4, 32], strides = [1, 1]} : vector<4x128xf32> to vector<4x32xf32>
    %229 = vector.extract_strided_slice %225 {offsets = [0, 96], sizes = [4, 32], strides = [1, 1]} : vector<4x128xf32> to vector<4x32xf32>
    %230 = vector.extract_strided_slice %226 {offsets = [0, 64], sizes = [4, 32], strides = [1, 1]} : vector<4x128xf32> to vector<4x32xf32>
    %231 = arith.mulf %228, %215 : vector<4x32xf32>
    %232 = arith.mulf %227, %230 : vector<4x32xf32>
    %233 = arith.addf %231, %232 : vector<4x32xf32>
    %234 = math.tanh %233 : vector<4x32xf32>
    %235 = arith.mulf %229, %234 : vector<4x32xf32>
    %c12_90 = arith.constant 12 : index
    %c0_91 = arith.constant 0 : index
    %236 = vector.load %arg16[%c12_90, %c0_91] : memref<32x128xf32, #tpu.memory_space<vmem>>, vector<4x128xf32>
    %cst_92 = arith.constant dense<0.000000e+00> : vector<4x128xf32>
    %237 = tpu.matmul %235, %171, %cst_92 {dimension_numbers = #tpu.dot_dimension_numbers<[1], [0], [0], [1], [0, 0, 1, 1], [], []>} : vector<4x32xf32>, vector<32x128xf32>, vector<4x128xf32> -> vector<4x128xf32>
    %238 = arith.addf %236, %237 : vector<4x128xf32>
    %239 = arith.negf %238 : vector<4x128xf32>
    %240 = math.exp %239 : vector<4x128xf32>
    %cst_93 = arith.constant 1.000000e+00 : f32
    %241 = vector.broadcast %cst_93 : f32 to vector<4x128xf32>
    %242 = arith.addf %241, %240 : vector<4x128xf32>
    %243 = arith.divf %241, %242 : vector<4x128xf32>
    %244 = math.tanh %238 : vector<4x128xf32>
    %245 = vector.extract_strided_slice %243 {offsets = [0, 0], sizes = [4, 32], strides = [1, 1]} : vector<4x128xf32> to vector<4x32xf32>
    %246 = vector.extract_strided_slice %243 {offsets = [0, 32], sizes = [4, 32], strides = [1, 1]} : vector<4x128xf32> to vector<4x32xf32>
    %247 = vector.extract_strided_slice %243 {offsets = [0, 96], sizes = [4, 32], strides = [1, 1]} : vector<4x128xf32> to vector<4x32xf32>
    %248 = vector.extract_strided_slice %244 {offsets = [0, 64], sizes = [4, 32], strides = [1, 1]} : vector<4x128xf32> to vector<4x32xf32>
    %249 = arith.mulf %246, %233 : vector<4x32xf32>
    %250 = arith.mulf %245, %248 : vector<4x32xf32>
    %251 = arith.addf %249, %250 : vector<4x32xf32>
    %252 = math.tanh %251 : vector<4x32xf32>
    %253 = arith.mulf %247, %252 : vector<4x32xf32>
    %c16_94 = arith.constant 16 : index
    %c0_95 = arith.constant 0 : index
    %254 = vector.load %arg16[%c16_94, %c0_95] : memref<32x128xf32, #tpu.memory_space<vmem>>, vector<4x128xf32>
    %cst_96 = arith.constant dense<0.000000e+00> : vector<4x128xf32>
    %255 = tpu.matmul %253, %171, %cst_96 {dimension_numbers = #tpu.dot_dimension_numbers<[1], [0], [0], [1], [0, 0, 1, 1], [], []>} : vector<4x32xf32>, vector<32x128xf32>, vector<4x128xf32> -> vector<4x128xf32>
    %256 = arith.addf %254, %255 : vector<4x128xf32>
    %257 = arith.negf %256 : vector<4x128xf32>
    %258 = math.exp %257 : vector<4x128xf32>
    %cst_97 = arith.constant 1.000000e+00 : f32
    %259 = vector.broadcast %cst_97 : f32 to vector<4x128xf32>
    %260 = arith.addf %259, %258 : vector<4x128xf32>
    %261 = arith.divf %259, %260 : vector<4x128xf32>
    %262 = math.tanh %256 : vector<4x128xf32>
    %263 = vector.extract_strided_slice %261 {offsets = [0, 0], sizes = [4, 32], strides = [1, 1]} : vector<4x128xf32> to vector<4x32xf32>
    %264 = vector.extract_strided_slice %261 {offsets = [0, 32], sizes = [4, 32], strides = [1, 1]} : vector<4x128xf32> to vector<4x32xf32>
    %265 = vector.extract_strided_slice %261 {offsets = [0, 96], sizes = [4, 32], strides = [1, 1]} : vector<4x128xf32> to vector<4x32xf32>
    %266 = vector.extract_strided_slice %262 {offsets = [0, 64], sizes = [4, 32], strides = [1, 1]} : vector<4x128xf32> to vector<4x32xf32>
    %267 = arith.mulf %264, %251 : vector<4x32xf32>
    %268 = arith.mulf %263, %266 : vector<4x32xf32>
    %269 = arith.addf %267, %268 : vector<4x32xf32>
    %270 = math.tanh %269 : vector<4x32xf32>
    %271 = arith.mulf %265, %270 : vector<4x32xf32>
    %c20_98 = arith.constant 20 : index
    %c0_99 = arith.constant 0 : index
    %272 = vector.load %arg16[%c20_98, %c0_99] : memref<32x128xf32, #tpu.memory_space<vmem>>, vector<4x128xf32>
    %cst_100 = arith.constant dense<0.000000e+00> : vector<4x128xf32>
    %273 = tpu.matmul %271, %171, %cst_100 {dimension_numbers = #tpu.dot_dimension_numbers<[1], [0], [0], [1], [0, 0, 1, 1], [], []>} : vector<4x32xf32>, vector<32x128xf32>, vector<4x128xf32> -> vector<4x128xf32>
    %274 = arith.addf %272, %273 : vector<4x128xf32>
    %275 = arith.negf %274 : vector<4x128xf32>
    %276 = math.exp %275 : vector<4x128xf32>
    %cst_101 = arith.constant 1.000000e+00 : f32
    %277 = vector.broadcast %cst_101 : f32 to vector<4x128xf32>
    %278 = arith.addf %277, %276 : vector<4x128xf32>
    %279 = arith.divf %277, %278 : vector<4x128xf32>
    %280 = math.tanh %274 : vector<4x128xf32>
    %281 = vector.extract_strided_slice %279 {offsets = [0, 0], sizes = [4, 32], strides = [1, 1]} : vector<4x128xf32> to vector<4x32xf32>
    %282 = vector.extract_strided_slice %279 {offsets = [0, 32], sizes = [4, 32], strides = [1, 1]} : vector<4x128xf32> to vector<4x32xf32>
    %283 = vector.extract_strided_slice %279 {offsets = [0, 96], sizes = [4, 32], strides = [1, 1]} : vector<4x128xf32> to vector<4x32xf32>
    %284 = vector.extract_strided_slice %280 {offsets = [0, 64], sizes = [4, 32], strides = [1, 1]} : vector<4x128xf32> to vector<4x32xf32>
    %285 = arith.mulf %282, %269 : vector<4x32xf32>
    %286 = arith.mulf %281, %284 : vector<4x32xf32>
    %287 = arith.addf %285, %286 : vector<4x32xf32>
    %288 = math.tanh %287 : vector<4x32xf32>
    %289 = arith.mulf %283, %288 : vector<4x32xf32>
    %c24_102 = arith.constant 24 : index
    %c0_103 = arith.constant 0 : index
    %290 = vector.load %arg16[%c24_102, %c0_103] : memref<32x128xf32, #tpu.memory_space<vmem>>, vector<4x128xf32>
    %cst_104 = arith.constant dense<0.000000e+00> : vector<4x128xf32>
    %291 = tpu.matmul %289, %171, %cst_104 {dimension_numbers = #tpu.dot_dimension_numbers<[1], [0], [0], [1], [0, 0, 1, 1], [], []>} : vector<4x32xf32>, vector<32x128xf32>, vector<4x128xf32> -> vector<4x128xf32>
    %292 = arith.addf %290, %291 : vector<4x128xf32>
    %293 = arith.negf %292 : vector<4x128xf32>
    %294 = math.exp %293 : vector<4x128xf32>
    %cst_105 = arith.constant 1.000000e+00 : f32
    %295 = vector.broadcast %cst_105 : f32 to vector<4x128xf32>
    %296 = arith.addf %295, %294 : vector<4x128xf32>
    %297 = arith.divf %295, %296 : vector<4x128xf32>
    %298 = math.tanh %292 : vector<4x128xf32>
    %299 = vector.extract_strided_slice %297 {offsets = [0, 0], sizes = [4, 32], strides = [1, 1]} : vector<4x128xf32> to vector<4x32xf32>
    %300 = vector.extract_strided_slice %297 {offsets = [0, 32], sizes = [4, 32], strides = [1, 1]} : vector<4x128xf32> to vector<4x32xf32>
    %301 = vector.extract_strided_slice %297 {offsets = [0, 96], sizes = [4, 32], strides = [1, 1]} : vector<4x128xf32> to vector<4x32xf32>
    %302 = vector.extract_strided_slice %298 {offsets = [0, 64], sizes = [4, 32], strides = [1, 1]} : vector<4x128xf32> to vector<4x32xf32>
    %303 = arith.mulf %300, %287 : vector<4x32xf32>
    %304 = arith.mulf %299, %302 : vector<4x32xf32>
    %305 = arith.addf %303, %304 : vector<4x32xf32>
    %306 = math.tanh %305 : vector<4x32xf32>
    %307 = arith.mulf %301, %306 : vector<4x32xf32>
    %c28_106 = arith.constant 28 : index
    %c0_107 = arith.constant 0 : index
    %308 = vector.load %arg16[%c28_106, %c0_107] : memref<32x128xf32, #tpu.memory_space<vmem>>, vector<4x128xf32>
    %cst_108 = arith.constant dense<0.000000e+00> : vector<4x128xf32>
    %309 = tpu.matmul %307, %171, %cst_108 {dimension_numbers = #tpu.dot_dimension_numbers<[1], [0], [0], [1], [0, 0, 1, 1], [], []>} : vector<4x32xf32>, vector<32x128xf32>, vector<4x128xf32> -> vector<4x128xf32>
    %310 = arith.addf %308, %309 : vector<4x128xf32>
    %311 = arith.negf %310 : vector<4x128xf32>
    %312 = math.exp %311 : vector<4x128xf32>
    %cst_109 = arith.constant 1.000000e+00 : f32
    %313 = vector.broadcast %cst_109 : f32 to vector<4x128xf32>
    %314 = arith.addf %313, %312 : vector<4x128xf32>
    %315 = arith.divf %313, %314 : vector<4x128xf32>
    %316 = math.tanh %310 : vector<4x128xf32>
    %317 = vector.extract_strided_slice %315 {offsets = [0, 0], sizes = [4, 32], strides = [1, 1]} : vector<4x128xf32> to vector<4x32xf32>
    %318 = vector.extract_strided_slice %315 {offsets = [0, 32], sizes = [4, 32], strides = [1, 1]} : vector<4x128xf32> to vector<4x32xf32>
    %319 = vector.extract_strided_slice %315 {offsets = [0, 96], sizes = [4, 32], strides = [1, 1]} : vector<4x128xf32> to vector<4x32xf32>
    %320 = vector.extract_strided_slice %316 {offsets = [0, 64], sizes = [4, 32], strides = [1, 1]} : vector<4x128xf32> to vector<4x32xf32>
    %321 = arith.mulf %318, %305 : vector<4x32xf32>
    %322 = arith.mulf %317, %320 : vector<4x32xf32>
    %323 = arith.addf %321, %322 : vector<4x32xf32>
    %324 = math.tanh %323 : vector<4x32xf32>
    %325 = arith.mulf %319, %324 : vector<4x32xf32>
    %c1_110 = arith.constant 1 : index
    %c0_111 = arith.constant 0 : index
    %c0_112 = arith.constant 0 : index
    %326 = vector.load %arg14[%c1_110, %c0_111, %c0_112] : memref<2x4x32xf32, #tpu.memory_space<vmem>>, vector<1x4x32xf32>
    %327 = vector.shape_cast %326 : vector<1x4x32xf32> to vector<4x32xf32>
    %328 = vector.shape_cast %325 : vector<4x32xf32> to vector<1x4x32xf32>
    tpu.vector_store %arg14[%c1_110, %c0_111, %c0_112], %328 {strides = array<i32>} : memref<2x4x32xf32, #tpu.memory_space<vmem>>, vector<1x4x32xf32>,
    %c1_113 = arith.constant 1 : index
    %c0_114 = arith.constant 0 : index
    %c0_115 = arith.constant 0 : index
    %329 = vector.load %arg15[%c1_113, %c0_114, %c0_115] : memref<2x4x32xf32, #tpu.memory_space<vmem>>, vector<1x4x32xf32>
    %330 = vector.shape_cast %329 : vector<1x4x32xf32> to vector<4x32xf32>
    %331 = vector.shape_cast %323 : vector<4x32xf32> to vector<1x4x32xf32>
    tpu.vector_store %arg15[%c1_113, %c0_114, %c0_115], %331 {strides = array<i32>} : memref<2x4x32xf32, #tpu.memory_space<vmem>>, vector<1x4x32xf32>,
    %c0_116 = arith.constant 0 : index
    %c0_117 = arith.constant 0 : index
    %332 = vector.load %arg9[%c0_116, %c0_117] : memref<32x64xf32, #tpu.memory_space<vmem>>, vector<32x64xf32>
    %cst_118 = arith.constant dense<0.000000e+00> : vector<4x64xf32>
    %333 = tpu.matmul %325, %332, %cst_118 {dimension_numbers = #tpu.dot_dimension_numbers<[1], [0], [0], [1], [0, 0, 1, 1], [], []>} : vector<4x32xf32>, vector<32x64xf32>, vector<4x64xf32> -> vector<4x64xf32>
    %c0_119 = arith.constant 0 : index
    %c0_120 = arith.constant 0 : index
    %334 = vector.load %arg10[%c0_119, %c0_120] : memref<1x64xf32, #tpu.memory_space<vmem>>, vector<1x64xf32>
    %335 = vector.broadcast %334 : vector<1x64xf32> to vector<4x64xf32>
    %336 = arith.addf %333, %335 : vector<4x64xf32>
    %cst_121 = arith.constant 0.000000e+00 : f32
    %337 = vector.broadcast %cst_121 : f32 to vector<4x64xf32>
    %338 = arith.maximumf %336, %337 : vector<4x64xf32>
    %c0_122 = arith.constant 0 : index
    %c0_123 = arith.constant 0 : index
    %339 = vector.load %arg11[%c0_122, %c0_123] : memref<64x128xf32, #tpu.memory_space<vmem>>, vector<64x128xf32>
    %cst_124 = arith.constant dense<0.000000e+00> : vector<4x128xf32>
    %340 = tpu.matmul %338, %339, %cst_124 {dimension_numbers = #tpu.dot_dimension_numbers<[1], [0], [0], [1], [0, 0, 1, 1], [], []>} : vector<4x64xf32>, vector<64x128xf32>, vector<4x128xf32> -> vector<4x128xf32>
    %c0_125 = arith.constant 0 : index
    %c0_126 = arith.constant 0 : index
    %341 = vector.load %arg12[%c0_125, %c0_126] : memref<1x128xf32, #tpu.memory_space<vmem>>, vector<1x128xf32>
    %342 = vector.broadcast %341 : vector<1x128xf32> to vector<4x128xf32>
    %343 = arith.addf %340, %342 : vector<4x128xf32>
    %344 = arith.negf %343 : vector<4x128xf32>
    %345 = math.exp %344 : vector<4x128xf32>
    %cst_127 = arith.constant 1.000000e+00 : f32
    %346 = vector.broadcast %cst_127 : f32 to vector<4x128xf32>
    %347 = arith.addf %346, %345 : vector<4x128xf32>
    %348 = arith.divf %346, %347 : vector<4x128xf32>
    %c0_128 = arith.constant 0 : index
    %c0_129 = arith.constant 0 : index
    %349 = vector.load %arg13[%c0_128, %c0_129] : memref<4x128xf32, #tpu.memory_space<vmem>>, vector<4x128xf32>
    tpu.vector_store %arg13[%c0_128, %c0_129], %348 {strides = array<i32>} : memref<4x128xf32, #tpu.memory_space<vmem>>, vector<4x128xf32>,
    return
  }
}

</mosaic_0001>

<bundles_post_ra>
// kernel: lstm_future_change_forward.1
= control target key start
LH: loop header
LB: loop body
LE: loop exit
PB: predicated region body
PF: predicated region fallthrough
CT: control target
= control target key end

     0   :  { %s3711_s0 = inlined_call_operand.vmem [shape: f32[32,16], index: 0, kind: input, shape index: {}]   ;;  %s3712_s1 = inlined_call_operand.hbm [shape: f32[2,4,32], index: 1, kind: input, shape index: {}]   ;;  %s3713_s2 = inlined_call_operand.hbm [shape: f32[2,4,32], index: 2, kind: input, shape index: {}]   ;;  %s3714_s3 = inlined_call_operand.vmem [shape: f32[16,128], index: 3, kind: input, shape index: {}]   ;;  %s3715_s4 = inlined_call_operand.hbm [shape: f32[32,128], index: 4, kind: input, shape index: {}]   ;;  %s3716_s5 = inlined_call_operand.hbm [shape: f32[32,128], index: 5, kind: input, shape index: {}]   ;;  %s3717_s6 = inlined_call_operand.hbm [shape: f32[32,128], index: 6, kind: input, shape index: {}]   ;;  %s3718_s7 = inlined_call_operand.hbm [shape: f32[1,128], index: 7, kind: input, shape index: {}]   ;;  %s3719_s8 = inlined_call_operand.hbm [shape: f32[1,128], index: 8, kind: input, shape index: {}]   ;;  %s3720_s9 = inlined_call_operand.vmem [shape: f32[32,64], index: 9, kind: input, shape index: {}]   ;;  %s3721_s10 = inlined_call_operand.hbm [shape: f32[1,64], index: 10, kind: input, shape index: {}]   ;;  %s3722_s11 = inlined_call_operand.vmem [shape: f32[64,128], index: 11, kind: input, shape index: {}]   ;;  %s3723_s12 = inlined_call_operand.vmem [shape: f32[1,128], index: 12, kind: input, shape index: {}]   ;;  %s3724_s13 = inlined_call_operand.vmem [shape: f32[4,128], index: 13, kind: output, shape index: {0}]   ;;  %s3725_s14 = inlined_call_operand.hbm [shape: f32[2,4,32], index: 14, kind: output, shape index: {1}]   ;;  %s3726_s15 = inlined_call_operand.hbm [shape: f32[2,4,32], index: 15, kind: output, shape index: {2}]  }
   0x1   :  { %3727 = sst [smem:[#allocation28_spill]] %s3724_s13 }
   0x2   :  { %21 = vsyncpa [#allocation5], 0 }
   0x3   :  { %22 = vsyncpa [#allocation8], 0 }
   0x4   :  { %23 = vsyncpa [#allocation11], 0 }
   0x5   :  { %24 = vsyncpa [#allocation14], 0 }
   0x6   :  { %25 = vsyncpa [#allocation17], 0 }
   0x7   :  { %26 = vsyncpa [#allocation6], 0 }
   0x8   :  { %27 = vsyncpa [#allocation20], 0  ;;  %s3173_s18 = smov [#allocation7]   ;;  %s2939_s22 = scalar_lea.hbm %s3713_s2, 128 }
   0x9   :  { %s47_s19 = sshll.u32 %s3173_s18, 4  ;;  %p2940_p0 = scmp.ne.s32.totalorder %s3713_s2, %s2939_s22  ;;  %s48_s19 = int_to_ptr.vmem [resolvable:$true] %s47_s19 }
   0xa   :  { %p2943_p1 = scmp.lt.u32.totalorder %s2939_s22, %s3713_s2 }
   0xc   :  { %p2945_p2 = pnand %p2943_p1, %p2940_p0 }
   0xe   :  { %2948 = shalt.err (!%p2945_p2)
}
   0xf   :  { %s2949_s27 = scalar_lea.vmem %s48_s19, 128  ;;  %p2954_p4 = scmp.lt.s32.totalorder %s48_s19, %s48_s19 }
  0x10   :  { %p2950_p3 = scmp.ne.s32.totalorder %s48_s19, %s2949_s27  ;;  %p2955_p5 = scmp.lt.s32.totalorder %s2949_s27, %s2949_s27 }
  0x12   :  { %p2956_p6 = por %p2955_p5, %p2954_p4 }
  0x14   :  { %p2957_p7 = pnand %p2956_p6, %p2950_p3 }
  0x16   :  { %2960 = shalt.err (!%p2957_p7)
}
  0x17   :  { %s3174_s28 = smov 64   ;;  %s3175_s29 = smov 4  }
  0x18   :  { %53 = dma.hbm_to_vmem [thread:$0]  %s3713_s2, 128, %s48_s19, [#allocation8], %s3174_s28, %s3174_s28, %s3175_s29  }
  0x19   :  { %s3176_s17 = smov [#allocation10]   ;;  %s3177_s20 = smov [#allocation13]  }
  0x1a   :  { %s73_s18 = sshll.u32 %s3176_s17, 4  ;;  %s98_s21 = sshll.u32 %s3177_s20, 4  ;;  %s74_s18 = int_to_ptr.vmem [resolvable:$true] %s73_s18  ;;  %s99_s21 = int_to_ptr.vmem [resolvable:$true] %s98_s21 }
  0x1b   :  { %s2961_s24 = scalar_lea.hbm %s3716_s5, 512 }
  0x1c   :  { %p2962_p8 = scmp.ne.s32.totalorder %s3716_s5, %s2961_s24  ;;  %p2965_p9 = scmp.lt.u32.totalorder %s2961_s24, %s3716_s5 }
  0x1e   :  { %p2967_p10 = pnand %p2965_p9, %p2962_p8 }
  0x20   :  { %2970 = shalt.err (!%p2967_p10)
}
  0x21   :  { %s2971_s2 = scalar_lea.vmem %s74_s18, 512  ;;  %p2976_p12 = scmp.lt.s32.totalorder %s74_s18, %s74_s18 }
  0x22   :  { %p2972_p11 = scmp.ne.s32.totalorder %s74_s18, %s2971_s2  ;;  %p2977_p13 = scmp.lt.s32.totalorder %s2971_s2, %s2971_s2 }
  0x24   :  { %p2978_p0 = por %p2977_p13, %p2976_p12 }
  0x26   :  { %p2979_p1 = pnand %p2978_p0, %p2972_p11 }
  0x28   :  { %2982 = shalt.err (!%p2979_p1)
}
  0x29   :  { %s3178_s19 = smov 128   ;;  %s3179_s30 = smov 8  }
  0x2a   :  { %79 = dma.hbm_to_vmem [thread:$0]  %s3716_s5, 512, %s74_s18, [#allocation11], %s3178_s19, %s3178_s19, %s3179_s30  }
  0x2b   :  { %s2983_s22 = scalar_lea.hbm %s3718_s7, 16 }
  0x2c   :  { %p2984_p2 = scmp.ne.s32.totalorder %s3718_s7, %s2983_s22  ;;  %p2987_p3 = scmp.lt.u32.totalorder %s2983_s22, %s3718_s7 }
  0x2e   :  { %p2989_p4 = pnand %p2987_p3, %p2984_p2 }
  0x30   :  { %2992 = shalt.err (!%p2989_p4)
}
  0x31   :  { %s2993_s27 = scalar_lea.vmem %s99_s21, 16  ;;  %s2997_s2 = scalar_lea.vmem %s99_s21, 32 }
  0x32   :  { %p2994_p5 = scmp.ne.s32.totalorder %s99_s21, %s2993_s27  ;;  %p2998_p6 = scmp.lt.s32.totalorder %s99_s21, %s99_s21 }
  0x33   :  { %p2999_p7 = scmp.lt.s32.totalorder %s2997_s2, %s2993_s27 }
  0x35   :  { %p3000_p8 = por %p2999_p7, %p2998_p6 }
  0x37   :  { %p3001_p9 = pnand %p3000_p8, %p2994_p5 }
  0x39   :  { %3004 = shalt.err (!%p3001_p9)
}
  0x3a   :  { %101 = dma.hbm_to_vmem [thread:$0]  %s3718_s7, 16, %s99_s21, [#allocation14]  }
  0x3b   :  { %s3180_s16 = smov [#allocation4]   ;;  %s3181_s13 = smov [#allocation9]  }
  0x3c   :  { %s35_s17 = sshll.u32 %s3180_s16, 4  ;;  %s61_s20 = sshll.u32 %s3181_s13, 4  ;;  %s36_s17 = int_to_ptr.vmem [resolvable:$true] %s35_s17  ;;  %s62_s20 = int_to_ptr.vmem [resolvable:$true] %s61_s20 }
  0x3d   :  { %s3005_s24 = scalar_lea.hbm %s3712_s1, 128 }
  0x3e   :  { %p3006_p10 = scmp.ne.s32.totalorder %s3712_s1, %s3005_s24  ;;  %p3009_p11 = scmp.lt.u32.totalorder %s3005_s24, %s3712_s1 }
  0x40   :  { %p3011_p12 = pnand %p3009_p11, %p3006_p10 }
  0x42   :  { %3014 = shalt.err (!%p3011_p12)
}
  0x43   :  { %s3015_s7 = scalar_lea.vmem %s36_s17, 128  ;;  %p3020_p0 = scmp.lt.s32.totalorder %s36_s17, %s36_s17 }
  0x44   :  { %p3016_p13 = scmp.ne.s32.totalorder %s36_s17, %s3015_s7  ;;  %p3021_p1 = scmp.lt.s32.totalorder %s3015_s7, %s3015_s7 }
  0x46   :  { %p3022_p2 = por %p3021_p1, %p3020_p0 }
  0x48   :  { %p3023_p3 = pnand %p3022_p2, %p3016_p13 }
  0x4a   :  { %3026 = shalt.err (!%p3023_p3)
}
  0x4b   :  { %41 = dma.hbm_to_vmem [thread:$0]  %s3712_s1, 128, %s36_s17, [#allocation5], %s3174_s28, %s3174_s28, %s3175_s29  }
  0x4c   :  { %s3027_s13 = scalar_lea.hbm %s3715_s4, 512 }
  0x4d   :  { %p3028_p4 = scmp.ne.s32.totalorder %s3715_s4, %s3027_s13  ;;  %p3031_p5 = scmp.lt.u32.totalorder %s3027_s13, %s3715_s4 }
  0x4f   :  { %p3033_p6 = pnand %p3031_p5, %p3028_p4 }
  0x51   :  { %3036 = shalt.err (!%p3033_p6)
}
  0x52   :  { %s3037_s26 = scalar_lea.vmem %s62_s20, 512  ;;  %p3042_p8 = scmp.lt.s32.totalorder %s62_s20, %s62_s20 }
  0x53   :  { %p3038_p7 = scmp.ne.s32.totalorder %s62_s20, %s3037_s26  ;;  %p3043_p9 = scmp.lt.s32.totalorder %s3037_s26, %s3037_s26 }
  0x55   :  { %p3044_p10 = por %p3043_p9, %p3042_p8 }
  0x57   :  { %p3045_p11 = pnand %p3044_p10, %p3038_p7 }
  0x59   :  { %3048 = shalt.err (!%p3045_p11)
}
  0x5a   :  { %67 = dma.hbm_to_vmem [thread:$0]  %s3715_s4, 512, %s62_s20, [#allocation8], %s3178_s19, %s3178_s19, %s3179_s30  }
  0x5b   :  { %s3182_s27 = smov [#allocation12]   ;;  %s3183_s7 = smov [#allocation15]  }
  0x5c   :  { %s85_s2 = sshll.u32 %s3182_s27, 4  ;;  %s108_s21 = sshll.u32 %s3183_s7, 4  ;;  %s86_s2 = int_to_ptr.vmem [resolvable:$true] %s85_s2  ;;  %s109_s21 = int_to_ptr.vmem [resolvable:$true] %s108_s21 }
  0x5d   :  { %s3049_s16 = scalar_lea.hbm %s3717_s6, 512 }
  0x5e   :  { %p3050_p12 = scmp.ne.s32.totalorder %s3717_s6, %s3049_s16  ;;  %p3053_p13 = scmp.lt.u32.totalorder %s3049_s16, %s3717_s6 }
  0x60   :  { %p3055_p0 = pnand %p3053_p13, %p3050_p12 }
  0x62   :  { %3058 = shalt.err (!%p3055_p0)
}
  0x63   :  { %s3059_s4 = scalar_lea.vmem %s86_s2, 512  ;;  %p3064_p2 = scmp.lt.s32.totalorder %s86_s2, %s86_s2 }
  0x64   :  { %p3060_p1 = scmp.ne.s32.totalorder %s86_s2, %s3059_s4  ;;  %p3065_p3 = scmp.lt.s32.totalorder %s3059_s4, %s3059_s4 }
  0x66   :  { %p3066_p4 = por %p3065_p3, %p3064_p2 }
  0x68   :  { %p3067_p5 = pnand %p3066_p4, %p3060_p1 }
  0x6a   :  { %3070 = shalt.err (!%p3067_p5)
}
  0x6b   :  { %91 = dma.hbm_to_vmem [thread:$0]  %s3717_s6, 512, %s86_s2, [#allocation11], %s3178_s19, %s3178_s19, %s3179_s30  }
  0x6c   :  { %s3071_s17 = scalar_lea.hbm %s3719_s8, 16 }
  0x6d   :  { %p3072_p6 = scmp.ne.s32.totalorder %s3719_s8, %s3071_s17  ;;  %p3075_p7 = scmp.lt.u32.totalorder %s3071_s17, %s3719_s8 }
  0x6f   :  { %p3077_p8 = pnand %p3075_p7, %p3072_p6 }
  0x71   :  { %3080 = shalt.err (!%p3077_p8)
}
  0x72   :  { %s3081_s16 = scalar_lea.vmem %s109_s21, 16  ;;  %s3085_s13 = scalar_lea.vmem %s109_s21, 32 }
  0x73   :  { %p3082_p9 = scmp.ne.s32.totalorder %s109_s21, %s3081_s16  ;;  %p3086_p10 = scmp.lt.s32.totalorder %s109_s21, %s109_s21 }
  0x74   :  { %p3087_p11 = scmp.lt.s32.totalorder %s3085_s13, %s3081_s16 }
  0x76   :  { %p3088_p12 = por %p3087_p11, %p3086_p10 }
  0x78   :  { %p3089_p13 = pnand %p3088_p12, %p3082_p9 }
  0x7a   :  { %3092 = shalt.err (!%p3089_p13)
}
  0x7b   :  { %111 = dma.hbm_to_vmem [thread:$0]  %s3719_s8, 16, %s109_s21, [#allocation14]  }
  0x7c   :  { %s3184_s30 = smov [#allocation16]   ;;  %s3093_s24 = scalar_lea.hbm %s3721_s10, 16 }
  0x7d   :  { %s120_s2 = sshll.u32 %s3184_s30, 4  ;;  %p3094_p0 = scmp.ne.s32.totalorder %s3721_s10, %s3093_s24  ;;  %s121_s2 = int_to_ptr.vmem [resolvable:$true] %s120_s2 }
  0x7e   :  { %p3097_p1 = scmp.lt.u32.totalorder %s3093_s24, %s3721_s10 }
  0x80   :  { %p3099_p2 = pnand %p3097_p1, %p3094_p0 }
  0x82   :  { %3102 = shalt.err (!%p3099_p2)
}
  0x83   :  { %s3103_s1 = scalar_lea.vmem %s121_s2, 16  ;;  %s3107_s8 = scalar_lea.vmem %s121_s2, 32 }
  0x84   :  { %p3104_p3 = scmp.ne.s32.totalorder %s121_s2, %s3103_s1  ;;  %p3108_p4 = scmp.lt.s32.totalorder %s121_s2, %s121_s2 }
  0x85   :  { %p3109_p5 = scmp.lt.s32.totalorder %s3107_s8, %s3103_s1 }
  0x87   :  { %p3110_p6 = por %p3109_p5, %p3108_p4 }
  0x89   :  { %p3111_p7 = pnand %p3110_p6, %p3104_p3 }
  0x8b   :  { %3114 = shalt.err (!%p3111_p7)
}
  0x8c   :  { %123 = dma.hbm_to_vmem [thread:$0]  %s3721_s10, 16, %s121_s2, [#allocation17]  }
  0x8d   :  { %3159 = dma.done.wait [#allocation5], 128  }
  0x8e   :  { %3160 = vsyncadd [#allocation5], 4294967168 }
  0x8f   :  { %3161 = dma.done.wait [#allocation8], 640  }
  0x90   :  { %3162 = vsyncadd [#allocation8], 4294966656 }
  0x91   :  { %3163 = dma.done.wait [#allocation11], 1024  }
  0x92   :  { %3164 = vsyncadd [#allocation11], 4294966272 }
  0x93   :  { %3165 = dma.done.wait [#allocation14], 32  }
  0x94   :  { %3166 = vsyncadd [#allocation14], 4294967264 }
  0x95   :  { %3167 = dma.done.wait [#allocation17], 16  }
  0x96   :  { %3168 = vsyncadd [#allocation17], 4294967280  ;;  %v3185_v0 = vmov 0.0|0.0   ;;  %vm3186_vm0 = vmmov 0   ;;  %v3187_v1 = vmov 0.0   ;;  %vm169_vm1 = vcmask 130048  }
  0x97   :  { %2678 = vmatprep.subr.bf16.mxu1 %v3185_v0  ;;  %2472 = vmatprep.mubr.msk.f32.mxu1 %vm3186_vm0, %v3187_v1  ;;  %v152_v2 = vld [vmem:[%s3714_s3] sm:$0xff]  ;;  %v153_v3 = vld [vmem:[%s3714_s3 + $0x8] sm:$0xff]  ;;  %v154_v6 = vld [vmem:[#allocation10] sm:$0xff]  ;;  %vm274_vm2 = vcmask 261120   ;;  %vm381_vm3 = vcmask 257024   ;;  %s3189_s8 = smov 96  }
  0x98   :  { %v158_v4 = vld [vmem:[%s3711_s0] sm:$0xff]  ;;  %v2662_v5 = vpack.c.bf16 %v153_v3, %v152_v2  ;;  %v155_v7 = vld [vmem:[#allocation10 + $0x8] sm:$0xff]  ;;  %v159_v9 = vld [vmem:[%s3711_s0 + $0x8] sm:$0xff]  ;;  %vm2155_vm4 = vcmask 523264   ;;  %s3190_s22 = smov [#allocation18]   ;;  %s3191_s24 = smov [#allocation19]  }
  0x99   :  { %2436 = vmatprep.mubr.msk.f32.mxu0 %vm169_vm1, %v158_v4  ;;  %v3396_v8 = vpack.c.bf16 %v155_v7, %v154_v6  ;;  %v156_v10 = vld [vmem:[#allocation10 + $0x10] sm:$0xff]  ;;  %v157_v11 = vld [vmem:[#allocation10 + $0x18] sm:$0xff]  ;;  %v160_v12 = vld [vmem:[%s3711_s0 + $0x10] sm:$0xff]  ;;  %s2243_s23 = sshll.u32 %s3190_s22, 4  ;;  %s2255_s4 = sshll.u32 %s3191_s24, 4  ;;  %s2244_s23 = int_to_ptr.vmem [resolvable:$true] %s2243_s23  ;;  %s3668_s4 = int_to_ptr.vmem [resolvable:$true] %s2255_s4 }
  0x9a   :  { %2663 = vmatprep.subr.bf16.mxu0 %v2662_v5  ;;  %v3408_v13 = vpack.c.bf16 %v157_v11, %v156_v10  ;;  %v161_v14 = vld [vmem:[%s3711_s0 + $0x18] sm:$0xff]  ;;  %v271_v15 = vld [vmem:[#allocation4] sm:$0xf]  ;;  %v2277_v16 = vld [vmem:[#allocation13] ss:$0 sm:$0xff]  ;;  %s3188_s0 = smov 32   ;;  %p3120_p9 = scmp.lt.s32.totalorder %s2244_s23, %s2244_s23 }
  0x9b   :  { %2665 = vmatpush3.bf16.msra.mxu0 %v2662_v5  ;;  %2680 = vmatpush3.bf16.msra.mxu1 %v3396_v8  ;;  %v272_v30 = vld [vmem:[#allocation7] sm:$0xf]  ;;  %s3115_s20 = scalar_lea.vmem %s2244_s23, 128 }
  0x9c   :  { %2666 = vmatprep.subr.bf16.mxu0 %v3185_v0  ;;  %2681 = vmatprep.subr.bf16.mxu1 %v3185_v0  ;;  %p3116_p8 = scmp.ne.s32.totalorder %s2244_s23, %s3115_s20  ;;  %p3121_p10 = scmp.lt.s32.totalorder %s3115_s20, %s3115_s20 }
  0x9e   :  { %2437 = vmatmul.mubr.msk.f32.vlgmr.msra.gmra.mrb[0].mxu0 %vm169_vm1, %v159_v9  ;;  %p3122_p11 = por %p3121_p10, %p3120_p9 }
  0x9f   :  { %2668 = vmatpush3.bf16.msra.mxu0 %v3396_v8  ;;  %2439 = vmatprep.mubr.msk.f32.mxu0 %vm169_vm1, %v160_v12 }
  0xa0   :  { %2669 = vmatprep.subr.bf16.mxu0 %v3185_v0  ;;  %2683 = vmatpush3.bf16.msra.mxu1 %v3408_v13  ;;  %p3123_p12 = pnand %p3122_p11, %p3116_p8 }
  0xa1   :  { %2690 = vmatprep.subr.bf16.mxu1 %v3185_v0 }
  0xa2   :  { %2440 = vmatmul.mubr.msk.f32.gmra.mrb[2].mxu0 %vm169_vm1, %v161_v14 }
  0xa3   :  { %2671 = vmatpush3.bf16.msra.mxu0 %v3408_v13  ;;  %2450 = vmatprep.mubr.msk.f32.mxu0 %vm3186_vm0, %v3187_v1 }
  0xa4   :  { %2672 = vmatprep.subr.bf16.mxu0 %v3185_v0 }
  0xa6   :  { %2451 = vmatmul.mubr.msk.f32.vlgmr.msra.gmra.mrb[4].mxu0 %vm274_vm2, %v271_v15 }
  0xa7   :  { %2674 = vmatpush3.bf16.msra.mxu0 %v3396_v8  ;;  %2461 = vmatprep.mubr.msk.f32.mxu0 %vm3186_vm0, %v3187_v1 }
  0xa8   :  { %2675 = vmatprep.subr.bf16.mxu0 %v3185_v0 }
  0xab   :  { %2677 = vmatpush3.bf16.msra.mxu0 %v3408_v13 }
  0xac   :  { %2684 = vmatprep.subr.bf16.mxu0 %v3185_v0 }
 0x171   :  { %v2438_v17 = vpop.f32.mrb[0].mxu0 }
 0x172   :  { %v254_v18 = vadd.f32 %v2438_v17, %v2277_v16  ;;  %v248_v19 = vpop.f32.mrb[1].mxu0 }
 0x173   :  { %v249_v20 = vadd.f32 %v2277_v16, %v248_v19 }
 0x174   :  { %268 = vst [vmem:[#allocation2 + $0x8] sm:$0xff] %v254_v18 }
 0x175   :  { %267 = vst [vmem:[#allocation2] sm:$0xff] %v249_v20  ;;  %v2441_v21 = vpop.f32.mrb[2].mxu0 }
 0x176   :  { %v264_v22 = vadd.f32 %v2441_v21, %v2277_v16  ;;  %v258_v23 = vpop.f32.mrb[3].mxu0 }
 0x177   :  { %v259_v24 = vadd.f32 %v2277_v16, %v258_v23 }
 0x178   :  { %270 = vst [vmem:[#allocation2 + $0x18] sm:$0xff] %v264_v22 }
 0x179   :  { %269 = vst [vmem:[#allocation2 + $0x10] sm:$0xff] %v259_v24  ;;  %v344_v25 = vpop.f32.mrb[4].mxu0 }
 0x17a   :  { %v2452_v26 = vpop.f32.mrb[5].mxu0 }
 0x17b   :  { %v486_v63 = vld [vmem:[#allocation2 + $0x8] sm:$0xf]  ;;  %v589_v21 = vld [vmem:[#allocation2 + $0xc] sm:$0xf] }
 0x17c   :  { %v273_v27 = vld [vmem:[#allocation2] sm:$0xf]  ;;  %v383_v45 = vld [vmem:[#allocation2 + $0x4] sm:$0xf] }
 0x17d   :  { %v348_v28 = vadd.f32 %v344_v25, %v273_v27 }
 0x17f   :  { %2807 = vtanh.f32 %v348_v28  ;;  %v2283_v31 = vmul.f32 -1.442695, %v348_v28 }
 0x181   :  { %2809 = vpow2.f32 %v2283_v31 }
 0x189   :  { %v2808_v29 = vpop.eup %2807 }
 0x18a   :  { %362 = vrot.lane.b32.xlu0 %v2808_v29, %s3174_s28 }
 0x18b   :  { %v2810_v32 = vpop.eup %2809 }
 0x18c   :  { %v352_v33 = vadd.f32 1.0, %v2810_v32 }
 0x18e   :  { %357 = vrot.lane.b32.xlu0 %v272_v30, %s3188_s0  ;;  %2811 = vrcp.f32 %v352_v33 }
 0x198   :  { %v2812_v34 = vpop.eup %2811 }
 0x1fc   :  { %v363_v35 = vpop.permute.xlu0 %362 }
 0x1fd   :  { %v365_v36 = vmul.f32 %v2812_v34, %v363_v35 }
 0x1ff   :  { %367 = vrot.lane.b32.xlu1 %v365_v36, %s3188_s0 }
 0x200   :  { %v358_v37 = vpop.permute.xlu0 %357 }
 0x201   :  { %v360_v38 = vmul.f32 %v2812_v34, %v358_v37 }
 0x271   :  { %v368_v39 = vpop.permute.xlu1 %367 }
 0x272   :  { %v370_v40 = vadd.f32 %v368_v39, %v360_v38  ;;  %v692_v39 = vld [vmem:[#allocation2 + $0x10] sm:$0xf] }
 0x274   :  { %2813 = vtanh.f32 %v370_v40 }
 0x27e   :  { %v2814_v41 = vpop.eup %2813 }
 0x27f   :  { %373 = vrot.lane.b32.xlu1 %v2814_v41, %s3174_s28 }
 0x2f1   :  { %v374_v42 = vpop.permute.xlu1 %373 }
 0x2f2   :  { %v376_v43 = vmul.f32 %v2812_v34, %v374_v42 }
 0x2f4   :  { %378 = vrot.lane.b32.xlu0 %v376_v43, %s3188_s0 }
 0x366   :  { %v379_v44 = vpop.permute.xlu0 %378 }
 0x367   :  { %382 = vst.msk [vmem:[#allocation3] sm:$0xf] %vm381_vm3, %v379_v44  ;;  %2462 = vmatmul.mubr.msk.f32.vlgmr.msra.gmra.mrb[6].mxu0 %vm274_vm2, %v379_v44 }
 0x368   :  { %2686 = vmatpush3.bf16.msra.mxu0 %v3396_v8  ;;  %2483 = vmatprep.mubr.msk.f32.mxu0 %vm3186_vm0, %v3187_v1 }
 0x369   :  { %2687 = vmatprep.subr.bf16.mxu0 %v3185_v0 }
 0x36c   :  { %2689 = vmatpush3.bf16.msra.mxu0 %v3408_v13 }
 0x36d   :  { %2696 = vmatprep.subr.bf16.mxu0 %v3185_v0 }
 0x43a   :  { %v452_v46 = vpop.f32.mrb[6].mxu0 }
 0x43b   :  { %v456_v47 = vadd.f32 %v452_v46, %v383_v45  ;;  %v2463_v48 = vpop.f32.mrb[7].mxu0 }
 0x43d   :  { %2815 = vtanh.f32 %v456_v47  ;;  %v2285_v50 = vmul.f32 -1.442695, %v456_v47 }
 0x43f   :  { %2817 = vpow2.f32 %v2285_v50 }
 0x447   :  { %v2816_v49 = vpop.eup %2815 }
 0x448   :  { %466 = vrot.lane.b32.xlu1 %v2816_v49, %s3174_s28 }
 0x449   :  { %v2818_v51 = vpop.eup %2817 }
 0x44a   :  { %v460_v52 = vadd.f32 1.0, %v2818_v51 }
 0x44c   :  { %2819 = vrcp.f32 %v460_v52 }
 0x456   :  { %v2820_v53 = vpop.eup %2819 }
 0x457   :  { %v464_v56 = vmul.f32 %v2820_v53, %v370_v40 }
 0x4ba   :  { %v467_v54 = vpop.permute.xlu1 %466 }
 0x4bb   :  { %v469_v55 = vmul.f32 %v2820_v53, %v467_v54 }
 0x4bd   :  { %471 = vrot.lane.b32.xlu0 %v469_v55, %s3188_s0 }
 0x52f   :  { %v472_v57 = vpop.permute.xlu0 %471 }
 0x530   :  { %v474_v58 = vadd.f32 %v472_v57, %v464_v56  ;;  %v795_v57 = vld [vmem:[#allocation2 + $0x14] sm:$0xf] }
 0x532   :  { %2821 = vtanh.f32 %v474_v58 }
 0x53c   :  { %v2822_v59 = vpop.eup %2821 }
 0x53d   :  { %477 = vrot.lane.b32.xlu1 %v2822_v59, %s3174_s28 }
 0x5af   :  { %v478_v60 = vpop.permute.xlu1 %477 }
 0x5b0   :  { %v480_v61 = vmul.f32 %v2820_v53, %v478_v60 }
 0x5b2   :  { %482 = vrot.lane.b32.xlu0 %v480_v61, %s3188_s0 }
 0x624   :  { %v483_v62 = vpop.permute.xlu0 %482 }
 0x625   :  { %485 = vst.msk [vmem:[#allocation3 + $0x4] sm:$0xf] %vm381_vm3, %v483_v62  ;;  %2473 = vmatmul.mubr.msk.f32.vlgmr.msra.gmra.mrb[0].mxu1 %vm274_vm2, %v483_v62 }
 0x626   :  { %2692 = vmatpush3.bf16.msra.mxu1 %v3396_v8  ;;  %2494 = vmatprep.mubr.msk.f32.mxu1 %vm3186_vm0, %v3187_v1 }
 0x627   :  { %2693 = vmatprep.subr.bf16.mxu1 %v3185_v0 }
 0x62a   :  { %2695 = vmatpush3.bf16.msra.mxu1 %v3408_v13 }
 0x62b   :  { %2702 = vmatprep.subr.bf16.mxu1 %v3185_v0 }
 0x6f8   :  { %v555_v2 = vpop.f32.mrb[0].mxu1 }
 0x6f9   :  { %v559_v3 = vadd.f32 %v555_v2, %v486_v63  ;;  %v2474_v4 = vpop.f32.mrb[1].mxu1 }
 0x6fb   :  { %2823 = vtanh.f32 %v559_v3  ;;  %v2287_v6 = vmul.f32 -1.442695, %v559_v3 }
 0x6fd   :  { %2825 = vpow2.f32 %v2287_v6 }
 0x705   :  { %v2824_v5 = vpop.eup %2823 }
 0x706   :  { %569 = vrot.lane.b32.xlu1 %v2824_v5, %s3174_s28 }
 0x707   :  { %v2826_v7 = vpop.eup %2825 }
 0x708   :  { %v563_v9 = vadd.f32 1.0, %v2826_v7  ;;  %v1110_v7 = vld [vmem:[#allocation9] sm:$0xff] }
 0x70a   :  { %2827 = vrcp.f32 %v563_v9  ;;  %v1111_v9 = vld [vmem:[#allocation9 + $0x8] sm:$0xff] }
 0x714   :  { %v2828_v10 = vpop.eup %2827 }
 0x715   :  { %v567_v14 = vmul.f32 %v2828_v10, %v474_v58 }
 0x778   :  { %v570_v11 = vpop.permute.xlu1 %569 }
 0x779   :  { %v572_v12 = vmul.f32 %v2828_v10, %v570_v11 }
 0x77b   :  { %574 = vrot.lane.b32.xlu0 %v572_v12, %s3188_s0 }
 0x7ed   :  { %v575_v15 = vpop.permute.xlu0 %574 }
 0x7ee   :  { %v577_v16 = vadd.f32 %v575_v15, %v567_v14  ;;  %v1112_v15 = vld [vmem:[#allocation9 + $0x10] sm:$0xff] }
 0x7f0   :  { %2829 = vtanh.f32 %v577_v16 }
 0x7fa   :  { %v2830_v17 = vpop.eup %2829 }
 0x7fb   :  { %580 = vrot.lane.b32.xlu1 %v2830_v17, %s3174_s28 }
 0x86d   :  { %v581_v18 = vpop.permute.xlu1 %580 }
 0x86e   :  { %v583_v19 = vmul.f32 %v2828_v10, %v581_v18  ;;  %v2714_v10 = vpack.c.bf16 %v1111_v9, %v1110_v7 }
 0x870   :  { %585 = vrot.lane.b32.xlu0 %v583_v19, %s3188_s0  ;;  %v1118_v19 = vld [vmem:[#allocation3] sm:$0xff] }
 0x8e2   :  { %v586_v20 = vpop.permute.xlu0 %585 }
 0x8e3   :  { %588 = vst.msk [vmem:[#allocation3 + $0x8] sm:$0xf] %vm381_vm3, %v586_v20  ;;  %2484 = vmatmul.mubr.msk.f32.vlgmr.msra.gmra.mrb[8].mxu0 %vm274_vm2, %v586_v20 }
 0x8e4   :  { %2698 = vmatpush3.bf16.msra.mxu0 %v3396_v8  ;;  %2505 = vmatprep.mubr.msk.f32.mxu0 %vm3186_vm0, %v3187_v1 }
 0x8e5   :  { %2699 = vmatprep.subr.bf16.mxu0 %v3185_v0 }
 0x8e8   :  { %2701 = vmatpush3.bf16.msra.mxu0 %v3408_v13 }
 0x8e9   :  { %2708 = vmatprep.subr.bf16.mxu0 %v3185_v0 }
 0x9b6   :  { %v658_v22 = vpop.f32.mrb[8].mxu0 }
 0x9b7   :  { %v662_v23 = vadd.f32 %v658_v22, %v589_v21  ;;  %v2485_v24 = vpop.f32.mrb[9].mxu0  ;;  %v898_v22 = vld [vmem:[#allocation2 + $0x18] sm:$0xf] }
 0x9b9   :  { %2831 = vtanh.f32 %v662_v23  ;;  %v2289_v26 = vmul.f32 -1.442695, %v662_v23 }
 0x9bb   :  { %2833 = vpow2.f32 %v2289_v26  ;;  %v3500_v26 = vld [vmem:[#allocation15] ss:$0 sm:$0xff] }
 0x9c3   :  { %v2832_v25 = vpop.eup %2831 }
 0x9c4   :  { %672 = vrot.lane.b32.xlu1 %v2832_v25, %s3174_s28 }
 0x9c5   :  { %v2834_v27 = vpop.eup %2833 }
 0x9c6   :  { %v666_v28 = vadd.f32 1.0, %v2834_v27 }
 0x9c8   :  { %2835 = vrcp.f32 %v666_v28 }
 0x9d2   :  { %v2836_v29 = vpop.eup %2835 }
 0x9d3   :  { %v670_v32 = vmul.f32 %v2836_v29, %v577_v16  ;;  %v1113_v16 = vld [vmem:[#allocation9 + $0x18] sm:$0xff] }
 0x9d4   :  { %v2718_v17 = vpack.c.bf16 %v1113_v16, %v1112_v15 }
 0xa36   :  { %v673_v30 = vpop.permute.xlu1 %672 }
 0xa37   :  { %v675_v31 = vmul.f32 %v2836_v29, %v673_v30 }
 0xa39   :  { %677 = vrot.lane.b32.xlu0 %v675_v31, %s3188_s0 }
 0xaab   :  { %v678_v33 = vpop.permute.xlu0 %677 }
 0xaac   :  { %v680_v34 = vadd.f32 %v678_v33, %v670_v32 }
 0xaae   :  { %2837 = vtanh.f32 %v680_v34 }
 0xab8   :  { %v2838_v35 = vpop.eup %2837 }
 0xab9   :  { %683 = vrot.lane.b32.xlu1 %v2838_v35, %s3174_s28 }
 0xb2b   :  { %v684_v36 = vpop.permute.xlu1 %683 }
 0xb2c   :  { %v686_v37 = vmul.f32 %v2836_v29, %v684_v36 }
 0xb2e   :  { %688 = vrot.lane.b32.xlu0 %v686_v37, %s3188_s0 }
 0xba0   :  { %v689_v38 = vpop.permute.xlu0 %688 }
 0xba1   :  { %691 = vst.msk [vmem:[#allocation3 + $0xc] sm:$0xf] %vm381_vm3, %v689_v38  ;;  %2495 = vmatmul.mubr.msk.f32.vlgmr.msra.gmra.mrb[2].mxu1 %vm274_vm2, %v689_v38 }
 0xba2   :  { %2704 = vmatpush3.bf16.msra.mxu1 %v3396_v8  ;;  %2516 = vmatprep.mubr.msk.f32.mxu1 %vm3186_vm0, %v3187_v1 }
 0xba3   :  { %2705 = vmatprep.subr.bf16.mxu1 %v3185_v0 }
 0xba6   :  { %2707 = vmatpush3.bf16.msra.mxu1 %v3408_v13 }
 0xba7   :  { %2715 = vmatprep.subr.bf16.mxu1 %v2714_v10 }
 0xba8   :  { %v1119_v20 = vld [vmem:[#allocation3 + $0x8] sm:$0xff] }
 0xc74   :  { %v761_v40 = vpop.f32.mrb[2].mxu1 }
 0xc75   :  { %v765_v41 = vadd.f32 %v761_v40, %v692_v39  ;;  %v2496_v42 = vpop.f32.mrb[3].mxu1 }
 0xc76   :  { %v1114_v42 = vld [vmem:[#allocation12] sm:$0xff] }
 0xc77   :  { %2839 = vtanh.f32 %v765_v41  ;;  %v2291_v44 = vmul.f32 -1.442695, %v765_v41 }
 0xc79   :  { %2841 = vpow2.f32 %v2291_v44 }
 0xc81   :  { %v2840_v43 = vpop.eup %2839 }
 0xc82   :  { %775 = vrot.lane.b32.xlu1 %v2840_v43, %s3174_s28  ;;  %v1115_v43 = vld [vmem:[#allocation12 + $0x8] sm:$0xff] }
 0xc83   :  { %v2842_v45 = vpop.eup %2841  ;;  %v3510_v44 = vpack.c.bf16 %v1115_v43, %v1114_v42 }
 0xc84   :  { %v769_v46 = vadd.f32 1.0, %v2842_v45  ;;  %v1116_v45 = vld [vmem:[#allocation12 + $0x10] sm:$0xff] }
 0xc86   :  { %2843 = vrcp.f32 %v769_v46  ;;  %v1117_v46 = vld [vmem:[#allocation12 + $0x18] sm:$0xff] }
 0xc90   :  { %v2844_v47 = vpop.eup %2843 }
 0xc91   :  { %v773_v50 = vmul.f32 %v2844_v47, %v680_v34 }
 0xcf4   :  { %v776_v48 = vpop.permute.xlu1 %775 }
 0xcf5   :  { %v778_v49 = vmul.f32 %v2844_v47, %v776_v48 }
 0xcf7   :  { %780 = vrot.lane.b32.xlu0 %v778_v49, %s3188_s0 }
 0xd69   :  { %v781_v51 = vpop.permute.xlu0 %780 }
 0xd6a   :  { %v783_v52 = vadd.f32 %v781_v51, %v773_v50  ;;  %v1231_v51 = vld [vmem:[#allocation4 + $0x4] sm:$0xf] }
 0xd6c   :  { %2845 = vtanh.f32 %v783_v52 }
 0xd76   :  { %v2846_v53 = vpop.eup %2845 }
 0xd77   :  { %786 = vrot.lane.b32.xlu1 %v2846_v53, %s3174_s28 }
 0xde9   :  { %v787_v54 = vpop.permute.xlu1 %786 }
 0xdea   :  { %v789_v55 = vmul.f32 %v2844_v47, %v787_v54  ;;  %v3514_v47 = vpack.c.bf16 %v1117_v46, %v1116_v45 }
 0xdec   :  { %791 = vrot.lane.b32.xlu0 %v789_v55, %s3188_s0 }
 0xe5e   :  { %v792_v56 = vpop.permute.xlu0 %791 }
 0xe5f   :  { %794 = vst.msk [vmem:[#allocation3 + $0x10] sm:$0xf] %vm381_vm3, %v792_v56  ;;  %2506 = vmatmul.mubr.msk.f32.vlgmr.msra.gmra.mrb[10].mxu0 %vm274_vm2, %v792_v56 }
 0xe60   :  { %2710 = vmatpush3.bf16.msra.mxu0 %v3396_v8  ;;  %2527 = vmatprep.mubr.msk.f32.mxu0 %vm3186_vm0, %v3187_v1 }
 0xe61   :  { %2711 = vmatprep.subr.bf16.mxu0 %v3185_v0 }
 0xe64   :  { %2713 = vmatpush3.bf16.msra.mxu0 %v3408_v13 }
 0xe65   :  { %2722 = vmatprep.subr.bf16.mxu0 %v3185_v0 }
 0xf32   :  { %v864_v58 = vpop.f32.mrb[10].mxu0 }
 0xf33   :  { %v868_v59 = vadd.f32 %v864_v58, %v795_v57  ;;  %v2507_v60 = vpop.f32.mrb[11].mxu0 }
 0xf35   :  { %2847 = vtanh.f32 %v868_v59  ;;  %v2293_v62 = vmul.f32 -1.442695, %v868_v59 }
 0xf37   :  { %2849 = vpow2.f32 %v2293_v62  ;;  %v1233_v62 = vld [vmem:[#allocation7 + $0x4] sm:$0xf] }
 0xf3f   :  { %v2848_v61 = vpop.eup %2847 }
 0xf40   :  { %878 = vrot.lane.b32.xlu1 %v2848_v61, %s3174_s28 }
 0xf41   :  { %v2850_v8 = vpop.eup %2849 }
 0xf42   :  { %v872_v63 = vadd.f32 1.0, %v2850_v8 }
 0xf44   :  { %2851 = vrcp.f32 %v872_v63 }
 0xf4e   :  { %v2852_v2 = vpop.eup %2851 }
 0xf4f   :  { %v876_v13 = vmul.f32 %v2852_v2, %v783_v52  ;;  %v1001_v52 = vld [vmem:[#allocation2 + $0x1c] sm:$0xf] }
 0xfb2   :  { %v879_v3 = vpop.permute.xlu1 %878 }
 0xfb3   :  { %v881_v4 = vmul.f32 %v2852_v2, %v879_v3 }
 0xfb5   :  { %883 = vrot.lane.b32.xlu0 %v881_v4, %s3188_s0 }
0x1027   :  { %v884_v5 = vpop.permute.xlu0 %883 }
0x1028   :  { %v886_v6 = vadd.f32 %v884_v5, %v876_v13 }
0x102a   :  { %2853 = vtanh.f32 %v886_v6 }
0x1034   :  { %v2854_v11 = vpop.eup %2853 }
0x1035   :  { %889 = vrot.lane.b32.xlu1 %v2854_v11, %s3174_s28 }
0x10a7   :  { %v890_v12 = vpop.permute.xlu1 %889 }
0x10a8   :  { %v892_v14 = vmul.f32 %v2852_v2, %v890_v12 }
0x10aa   :  { %894 = vrot.lane.b32.xlu0 %v892_v14, %s3188_s0 }
0x111c   :  { %v895_v18 = vpop.permute.xlu0 %894 }
0x111d   :  { %897 = vst.msk [vmem:[#allocation3 + $0x14] sm:$0xf] %vm381_vm3, %v895_v18  ;;  %2517 = vmatmul.mubr.msk.f32.vlgmr.msra.gmra.mrb[4].mxu1 %vm274_vm2, %v895_v18 }
0x111e   :  { %2717 = vmatpush3.bf16.msra.mxu1 %v2714_v10  ;;  %2538 = vmatprep.mubr.msk.f32.mxu1 %vm274_vm2, %v1118_v19 }
0x111f   :  { %2719 = vmatprep.subr.bf16.mxu1 %v2718_v17 }
0x1122   :  { %2721 = vmatpush3.bf16.msra.mxu1 %v2718_v17 }
0x1123   :  { %2728 = vmatprep.subr.bf16.mxu1 %v3185_v0 }
0x1124   :  { %v1120_v21 = vld [vmem:[#allocation3 + $0x10] sm:$0xff] }
0x1125   :  { %2539 = vmatmul.mubr.msk.f32.vlgmr.msra.gmra.mrb[6].mxu1 %vm274_vm2, %v1119_v20 }
0x1126   :  { %2541 = vmatprep.mubr.msk.f32.mxu1 %vm274_vm2, %v1120_v21  ;;  %2730 = vmatpush3.bf16.msra.mxu1 %v3510_v44 }
0x1127   :  { %2731 = vmatprep.subr.bf16.mxu1 %v3185_v0 }
0x112a   :  { %2733 = vmatpush3.bf16.msra.mxu1 %v3514_v47 }
0x112b   :  { %2740 = vmatprep.subr.bf16.mxu1 %v3185_v0 }
0x11f0   :  { %v967_v23 = vpop.f32.mrb[4].mxu1 }
0x11f1   :  { %v971_v24 = vadd.f32 %v967_v23, %v898_v22  ;;  %v2518_v25 = vpop.f32.mrb[5].mxu1 }
0x11f3   :  { %2855 = vtanh.f32 %v971_v24  ;;  %v2295_v32 = vmul.f32 -1.442695, %v971_v24 }
0x11f5   :  { %2857 = vpow2.f32 %v2295_v32 }
0x11f8   :  { %v2540_v27 = vpop.f32.mrb[6].mxu1 }
0x11f9   :  { %v1213_v28 = vadd.f32 %v2540_v27, %v3500_v26  ;;  %v1207_v29 = vpop.f32.mrb[7].mxu1 }
0x11fa   :  { %v1208_v30 = vadd.f32 %v3500_v26, %v1207_v29 }
0x11fb   :  { %1227 = vst [vmem:[#allocation2 + $0x8] sm:$0xff] %v1213_v28 }
0x11fc   :  { %1226 = vst [vmem:[#allocation2] sm:$0xff] %v1208_v30 }
0x11fd   :  { %v2856_v31 = vpop.eup %2855 }
0x11fe   :  { %981 = vrot.lane.b32.xlu1 %v2856_v31, %s3174_s28 }
0x11ff   :  { %v2858_v33 = vpop.eup %2857 }
0x1200   :  { %v975_v34 = vadd.f32 1.0, %v2858_v33 }
0x1202   :  { %2859 = vrcp.f32 %v975_v34 }
0x1203   :  { %v1234_v56 = vld [vmem:[#allocation2] sm:$0xf]  ;;  %v1337_v34 = vld [vmem:[#allocation2 + $0x4] sm:$0xf] }
0x120c   :  { %v2860_v35 = vpop.eup %2859 }
0x120d   :  { %v979_v38 = vmul.f32 %v2860_v35, %v886_v6 }
0x1270   :  { %v982_v36 = vpop.permute.xlu1 %981 }
0x1271   :  { %v984_v37 = vmul.f32 %v2860_v35, %v982_v36 }
0x1273   :  { %986 = vrot.lane.b32.xlu0 %v984_v37, %s3188_s0 }
0x12e5   :  { %v987_v39 = vpop.permute.xlu0 %986 }
0x12e6   :  { %v3506_v40 = vadd.f32 %v987_v39, %v979_v38 }
0x12e8   :  { %2861 = vtanh.f32 %v3506_v40 }
0x12f2   :  { %v2862_v41 = vpop.eup %2861 }
0x12f3   :  { %992 = vrot.lane.b32.xlu1 %v2862_v41, %s3174_s28 }
0x1365   :  { %v993_v48 = vpop.permute.xlu1 %992 }
0x1366   :  { %v995_v49 = vmul.f32 %v2860_v35, %v993_v48 }
0x1368   :  { %997 = vrot.lane.b32.xlu0 %v995_v49, %s3188_s0 }
0x13da   :  { %v998_v50 = vpop.permute.xlu0 %997 }
0x13db   :  { %1000 = vst.msk [vmem:[#allocation3 + $0x18] sm:$0xf] %vm381_vm3, %v998_v50  ;;  %2528 = vmatmul.mubr.msk.f32.vlgmr.msra.gmra.mrb[12].mxu0 %vm274_vm2, %v998_v50 }
0x13dc   :  { %2724 = vmatpush3.bf16.msra.mxu0 %v3510_v44  ;;  %2552 = vmatprep.mubr.msk.f32.mxu0 %vm3186_vm0, %v3187_v1 }
0x13dd   :  { %2725 = vmatprep.subr.bf16.mxu0 %v3185_v0 }
0x13e0   :  { %2727 = vmatpush3.bf16.msra.mxu0 %v3514_v47 }
0x13e1   :  { %2734 = vmatprep.subr.bf16.mxu0 %v3185_v0 }
0x13e3   :  { %2553 = vmatmul.mubr.msk.f32.vlgmr.msra.gmra.mrb[14].mxu0 %vm274_vm2, %v1231_v51 }
0x13e4   :  { %2736 = vmatpush3.bf16.msra.mxu0 %v3510_v44  ;;  %2574 = vmatprep.mubr.msk.f32.mxu0 %vm3186_vm0, %v3187_v1 }
0x13e5   :  { %2737 = vmatprep.subr.bf16.mxu0 %v3185_v0 }
0x13e8   :  { %2739 = vmatpush3.bf16.msra.mxu0 %v3514_v47 }
0x13e9   :  { %2746 = vmatprep.subr.bf16.mxu0 %v3185_v0 }
0x14ae   :  { %v1070_v53 = vpop.f32.mrb[12].mxu0 }
0x14af   :  { %v1074_v54 = vadd.f32 %v1070_v53, %v1001_v52  ;;  %v2529_v55 = vpop.f32.mrb[13].mxu0  ;;  %v1438_v53 = vld [vmem:[#allocation2 + $0x8] sm:$0xf] }
0x14b1   :  { %2863 = vtanh.f32 %v1074_v54  ;;  %v2297_v8 = vmul.f32 -1.442695, %v1074_v54 }
0x14b6   :  { %v1304_v57 = vpop.f32.mrb[14].mxu0 }
0x14b7   :  { %v1308_v58 = vadd.f32 %v1304_v57, %v1234_v56  ;;  %v2554_v59 = vpop.f32.mrb[15].mxu0 }
0x14b9   :  { %2865 = vtanh.f32 %v1308_v58  ;;  %v2304_v63 = vmul.f32 -1.442695, %v1308_v58 }
0x14ba   :  { %2867 = vpow2.f32 %v2297_v8 }
0x14bb   :  { %v2864_v60 = vpop.eup %2863  ;;  %2869 = vpow2.f32 %v2304_v63 }
0x14bc   :  { %1084 = vrot.lane.b32.xlu1 %v2864_v60, %s3174_s28 }
0x14c3   :  { %v2866_v61 = vpop.eup %2865 }
0x14c4   :  { %1322 = vrot.lane.b32.xlu0 %v2866_v61, %s3174_s28  ;;  %v2868_v2 = vpop.eup %2867 }
0x14c5   :  { %v1078_v3 = vadd.f32 1.0, %v2868_v2  ;;  %v2870_v4 = vpop.eup %2869 }
0x14c6   :  { %v1312_v13 = vadd.f32 1.0, %v2870_v4 }
0x14c7   :  { %2871 = vrcp.f32 %v1078_v3 }
0x14c8   :  { %1317 = vrot.lane.b32.xlu0 %v1233_v62, %s3188_s0  ;;  %2873 = vrcp.f32 %v1312_v13 }
0x14d1   :  { %v2872_v5 = vpop.eup %2871 }
0x14d2   :  { %v2874_v9 = vpop.eup %2873  ;;  %v1082_v12 = vmul.f32 %v2872_v5, %v3506_v40 }
0x152e   :  { %v1085_v6 = vpop.permute.xlu1 %1084 }
0x152f   :  { %v1087_v7 = vmul.f32 %v2872_v5, %v1085_v6 }
0x1531   :  { %1089 = vrot.lane.b32.xlu1 %v1087_v7, %s3188_s0  ;;  %v1539_v7 = vld [vmem:[#allocation2 + $0xc] sm:$0xf] }
0x1536   :  { %v1323_v10 = vpop.permute.xlu0 %1322 }
0x1537   :  { %v1325_v11 = vmul.f32 %v2874_v9, %v1323_v10 }
0x1539   :  { %1327 = vrot.lane.b32.xlu1 %v1325_v11, %s3188_s0 }
0x153a   :  { %v1318_v16 = vpop.permute.xlu0 %1317 }
0x153b   :  { %v1320_v17 = vmul.f32 %v2874_v9, %v1318_v16 }
0x15a3   :  { %v1090_v14 = vpop.permute.xlu1 %1089 }
0x15a4   :  { %v3540_v15 = vadd.f32 %v1090_v14, %v1082_v12 }
0x15a6   :  { %2875 = vtanh.f32 %v3540_v15 }
0x15ab   :  { %v1328_v18 = vpop.permute.xlu1 %1327 }
0x15ac   :  { %v1330_v19 = vadd.f32 %v1328_v18, %v1320_v17 }
0x15ae   :  { %2877 = vtanh.f32 %v1330_v19 }
0x15b0   :  { %v2876_v20 = vpop.eup %2875 }
0x15b1   :  { %1095 = vrot.lane.b32.xlu0 %v2876_v20, %s3174_s28 }
0x15b8   :  { %v2878_v21 = vpop.eup %2877 }
0x15b9   :  { %1333 = vrot.lane.b32.xlu1 %v2878_v21, %s3174_s28 }
0x1623   :  { %v1096_v22 = vpop.permute.xlu0 %1095 }
0x1624   :  { %v1098_v23 = vmul.f32 %v2872_v5, %v1096_v22 }
0x1626   :  { %1100 = vrot.lane.b32.xlu0 %v1098_v23, %s3188_s0 }
0x162b   :  { %v1334_v24 = vpop.permute.xlu1 %1333 }
0x162c   :  { %v1336_v25 = vmul.f32 %v2874_v9, %v1334_v24 }
0x162e   :  { %1339 = vrot.lane.b32.xlu1 %v1336_v25, %s3188_s0 }
0x1698   :  { %v1101_v27 = vpop.permute.xlu0 %1100 }
0x1699   :  { %1103 = vst.msk [vmem:[#allocation3 + $0x1c] sm:$0xf] %vm381_vm3, %v1101_v27  ;;  %1104 = vst.msk [vmem:[#allocation18] sm:$0xf] %vm381_vm3, %v1101_v27 }
0x16a0   :  { %v1121_v28 = vld [vmem:[#allocation3 + $0x18] sm:$0xff]  ;;  %v1340_v29 = vpop.permute.xlu1 %1339 }
0x16a1   :  { %2542 = vmatmul.mubr.msk.f32.gmra.mrb[8].mxu1 %vm274_vm2, %v1121_v28 }
0x16a2   :  { %2563 = vmatprep.mubr.msk.f32.mxu1 %vm3186_vm0, %v3187_v1 }
0x16a5   :  { %2564 = vmatmul.mubr.msk.f32.vlgmr.msra.gmra.mrb[10].mxu1 %vm274_vm2, %v1340_v29 }
0x16a6   :  { %2742 = vmatpush3.bf16.msra.mxu1 %v3510_v44  ;;  %2585 = vmatprep.mubr.msk.f32.mxu1 %vm3186_vm0, %v3187_v1 }
0x16a7   :  { %2743 = vmatprep.subr.bf16.mxu1 %v3185_v0 }
0x16aa   :  { %2745 = vmatpush3.bf16.msra.mxu1 %v3514_v47 }
0x16ab   :  { %2752 = vmatprep.subr.bf16.mxu1 %v3185_v0 }
0x1774   :  { %v2543_v30 = vpop.f32.mrb[8].mxu1 }
0x1775   :  { %v1223_v31 = vadd.f32 %v2543_v30, %v3500_v26  ;;  %v1217_v32 = vpop.f32.mrb[9].mxu1 }
0x1776   :  { %v1218_v33 = vadd.f32 %v3500_v26, %v1217_v32 }
0x1777   :  { %1229 = vst [vmem:[#allocation2 + $0x18] sm:$0xff] %v1223_v31 }
0x1778   :  { %1228 = vst [vmem:[#allocation2 + $0x10] sm:$0xff] %v1218_v33  ;;  %v1409_v35 = vpop.f32.mrb[10].mxu1 }
0x1779   :  { %v1413_v36 = vadd.f32 %v1409_v35, %v1337_v34  ;;  %v2565_v37 = vpop.f32.mrb[11].mxu1 }
0x177b   :  { %2879 = vtanh.f32 %v1413_v36  ;;  %v2306_v39 = vmul.f32 -1.442695, %v1413_v36 }
0x177d   :  { %2881 = vpow2.f32 %v2306_v39 }
0x177f   :  { %v1640_v29 = vld [vmem:[#allocation2 + $0x10] sm:$0xf] }
0x1785   :  { %v2880_v38 = vpop.eup %2879 }
0x1786   :  { %1423 = vrot.lane.b32.xlu0 %v2880_v38, %s3174_s28 }
0x1787   :  { %v2882_v40 = vpop.eup %2881 }
0x1788   :  { %v1417_v41 = vadd.f32 1.0, %v2882_v40 }
0x178a   :  { %2883 = vrcp.f32 %v1417_v41 }
0x1794   :  { %v2884_v42 = vpop.eup %2883 }
0x1795   :  { %v1421_v26 = vmul.f32 %v2884_v42, %v1330_v19 }
0x17f8   :  { %v1424_v43 = vpop.permute.xlu0 %1423 }
0x17f9   :  { %v1426_v45 = vmul.f32 %v2884_v42, %v1424_v43 }
0x17fb   :  { %1428 = vrot.lane.b32.xlu1 %v1426_v45, %s3188_s0 }
0x186d   :  { %v1429_v46 = vpop.permute.xlu1 %1428 }
0x186e   :  { %v1431_v48 = vadd.f32 %v1429_v46, %v1421_v26 }
0x1870   :  { %2885 = vtanh.f32 %v1431_v48 }
0x187a   :  { %v2886_v49 = vpop.eup %2885 }
0x187b   :  { %1434 = vrot.lane.b32.xlu0 %v2886_v49, %s3174_s28 }
0x18ed   :  { %v1435_v50 = vpop.permute.xlu0 %1434 }
0x18ee   :  { %v1437_v51 = vmul.f32 %v2884_v42, %v1435_v50 }
0x18f0   :  { %1440 = vrot.lane.b32.xlu1 %v1437_v51, %s3188_s0 }
0x1962   :  { %v1441_v52 = vpop.permute.xlu1 %1440 }
0x1963   :  { %2575 = vmatmul.mubr.msk.f32.vlgmr.msra.gmra.mrb[16].mxu0 %vm274_vm2, %v1441_v52 }
0x1964   :  { %2748 = vmatpush3.bf16.msra.mxu0 %v3510_v44  ;;  %2596 = vmatprep.mubr.msk.f32.mxu0 %vm3186_vm0, %v3187_v1 }
0x1965   :  { %2749 = vmatprep.subr.bf16.mxu0 %v3185_v0 }
0x1968   :  { %2751 = vmatpush3.bf16.msra.mxu0 %v3514_v47 }
0x1969   :  { %2758 = vmatprep.subr.bf16.mxu0 %v3185_v0 }
0x1a36   :  { %v1510_v54 = vpop.f32.mrb[16].mxu0 }
0x1a37   :  { %v1514_v55 = vadd.f32 %v1510_v54, %v1438_v53  ;;  %v2576_v56 = vpop.f32.mrb[17].mxu0 }
0x1a39   :  { %2887 = vtanh.f32 %v1514_v55  ;;  %v2308_v58 = vmul.f32 -1.442695, %v1514_v55 }
0x1a3b   :  { %2889 = vpow2.f32 %v2308_v58 }
0x1a43   :  { %v2888_v57 = vpop.eup %2887 }
0x1a44   :  { %1524 = vrot.lane.b32.xlu0 %v2888_v57, %s3174_s28 }
0x1a45   :  { %v2890_v59 = vpop.eup %2889 }
0x1a46   :  { %v1518_v60 = vadd.f32 1.0, %v2890_v59 }
0x1a48   :  { %2891 = vrcp.f32 %v1518_v60 }
0x1a52   :  { %v2892_v61 = vpop.eup %2891 }
0x1a53   :  { %v1522_v63 = vmul.f32 %v2892_v61, %v1431_v48  ;;  %v1741_v48 = vld [vmem:[#allocation2 + $0x14] sm:$0xf] }
0x1ab6   :  { %v1525_v62 = vpop.permute.xlu0 %1524 }
0x1ab7   :  { %v1527_v8 = vmul.f32 %v2892_v61, %v1525_v62 }
0x1ab9   :  { %1529 = vrot.lane.b32.xlu1 %v1527_v8, %s3188_s0 }
0x1b2b   :  { %v1530_v2 = vpop.permute.xlu1 %1529 }
0x1b2c   :  { %v1532_v3 = vadd.f32 %v1530_v2, %v1522_v63  ;;  %v1842_v63 = vld [vmem:[#allocation2 + $0x18] sm:$0xf] }
0x1b2e   :  { %2893 = vtanh.f32 %v1532_v3 }
0x1b38   :  { %v2894_v4 = vpop.eup %2893 }
0x1b39   :  { %1535 = vrot.lane.b32.xlu0 %v2894_v4, %s3174_s28 }
0x1bab   :  { %v1536_v13 = vpop.permute.xlu0 %1535 }
0x1bac   :  { %v1538_v5 = vmul.f32 %v2892_v61, %v1536_v13 }
0x1bae   :  { %1541 = vrot.lane.b32.xlu1 %v1538_v5, %s3188_s0 }
0x1c20   :  { %v1542_v6 = vpop.permute.xlu1 %1541 }
0x1c21   :  { %2586 = vmatmul.mubr.msk.f32.vlgmr.msra.gmra.mrb[12].mxu1 %vm274_vm2, %v1542_v6 }
0x1c22   :  { %2754 = vmatpush3.bf16.msra.mxu1 %v3510_v44  ;;  %2607 = vmatprep.mubr.msk.f32.mxu1 %vm3186_vm0, %v3187_v1 }
0x1c23   :  { %2755 = vmatprep.subr.bf16.mxu1 %v3185_v0 }
0x1c26   :  { %2757 = vmatpush3.bf16.msra.mxu1 %v3514_v47 }
0x1c27   :  { %2764 = vmatprep.subr.bf16.mxu1 %v3185_v0 }
0x1cf4   :  { %v1611_v9 = vpop.f32.mrb[12].mxu1 }
0x1cf5   :  { %v1615_v10 = vadd.f32 %v1611_v9, %v1539_v7  ;;  %v2587_v11 = vpop.f32.mrb[13].mxu1 }
0x1cf7   :  { %2895 = vtanh.f32 %v1615_v10  ;;  %v2310_v14 = vmul.f32 -1.442695, %v1615_v10 }
0x1cf9   :  { %2897 = vpow2.f32 %v2310_v14 }
0x1d01   :  { %v2896_v12 = vpop.eup %2895 }
0x1d02   :  { %1625 = vrot.lane.b32.xlu0 %v2896_v12, %s3174_s28 }
0x1d03   :  { %v2898_v16 = vpop.eup %2897 }
0x1d04   :  { %v1619_v17 = vadd.f32 1.0, %v2898_v16 }
0x1d06   :  { %2899 = vrcp.f32 %v1619_v17 }
0x1d10   :  { %v2900_v18 = vpop.eup %2899 }
0x1d11   :  { %v1623_v21 = vmul.f32 %v2900_v18, %v1532_v3 }
0x1d74   :  { %v1626_v19 = vpop.permute.xlu0 %1625 }
0x1d75   :  { %v1628_v20 = vmul.f32 %v2900_v18, %v1626_v19 }
0x1d77   :  { %1630 = vrot.lane.b32.xlu1 %v1628_v20, %s3188_s0 }
0x1de9   :  { %v1631_v22 = vpop.permute.xlu1 %1630 }
0x1dea   :  { %v1633_v23 = vadd.f32 %v1631_v22, %v1623_v21  ;;  %v1943_v21 = vld [vmem:[#allocation2 + $0x1c] sm:$0xf] }
0x1dec   :  { %2901 = vtanh.f32 %v1633_v23 }
0x1df6   :  { %v2902_v24 = vpop.eup %2901 }
0x1df7   :  { %1636 = vrot.lane.b32.xlu0 %v2902_v24, %s3174_s28 }
0x1e69   :  { %v1637_v25 = vpop.permute.xlu0 %1636 }
0x1e6a   :  { %v1639_v27 = vmul.f32 %v2900_v18, %v1637_v25 }
0x1e6c   :  { %1642 = vrot.lane.b32.xlu1 %v1639_v27, %s3188_s0 }
0x1ede   :  { %v1643_v28 = vpop.permute.xlu1 %1642 }
0x1edf   :  { %2597 = vmatmul.mubr.msk.f32.vlgmr.msra.gmra.mrb[18].mxu0 %vm274_vm2, %v1643_v28 }
0x1ee0   :  { %2760 = vmatpush3.bf16.msra.mxu0 %v3510_v44  ;;  %2618 = vmatprep.mubr.msk.f32.mxu0 %vm3186_vm0, %v3187_v1 }
0x1ee1   :  { %2761 = vmatprep.subr.bf16.mxu0 %v3185_v0 }
0x1ee4   :  { %2763 = vmatpush3.bf16.msra.mxu0 %v3514_v47 }
0x1ee5   :  { %2770 = vmatprep.subr.bf16.mxu0 %v3185_v0 }
0x1fb2   :  { %v1712_v30 = vpop.f32.mrb[18].mxu0 }
0x1fb3   :  { %v1716_v31 = vadd.f32 %v1712_v30, %v1640_v29  ;;  %v2598_v32 = vpop.f32.mrb[19].mxu0 }
0x1fb5   :  { %2903 = vtanh.f32 %v1716_v31  ;;  %v2312_v34 = vmul.f32 -1.442695, %v1716_v31 }
0x1fb7   :  { %2905 = vpow2.f32 %v2312_v34 }
0x1fbf   :  { %v2904_v33 = vpop.eup %2903 }
0x1fc0   :  { %1726 = vrot.lane.b32.xlu0 %v2904_v33, %s3174_s28 }
0x1fc1   :  { %v2906_v35 = vpop.eup %2905 }
0x1fc2   :  { %v1720_v36 = vadd.f32 1.0, %v2906_v35  ;;  %v2056_v35 = vld [vmem:[%s3720_s9] sm:$0xff] }
0x1fc4   :  { %2907 = vrcp.f32 %v1720_v36  ;;  %v2057_v36 = vld [vmem:[%s3720_s9 + $0x8] sm:$0xff] }
0x1fce   :  { %v2908_v37 = vpop.eup %2907 }
0x1fcf   :  { %v1724_v40 = vmul.f32 %v2908_v37, %v1633_v23 }
0x2032   :  { %v1727_v38 = vpop.permute.xlu0 %1726 }
0x2033   :  { %v1729_v39 = vmul.f32 %v2908_v37, %v1727_v38  ;;  %v2771_v38 = vpack.c.bf16 %v2057_v36, %v2056_v35 }
0x2035   :  { %1731 = vrot.lane.b32.xlu1 %v1729_v39, %s3188_s0  ;;  %v2059_v39 = vld [vmem:[%s3720_s9 + $0x18] sm:$0xff] }
0x20a7   :  { %v1732_v41 = vpop.permute.xlu1 %1731 }
0x20a8   :  { %v1734_v42 = vadd.f32 %v1732_v41, %v1724_v40 }
0x20aa   :  { %2909 = vtanh.f32 %v1734_v42 }
0x20b4   :  { %v2910_v43 = vpop.eup %2909 }
0x20b5   :  { %1737 = vrot.lane.b32.xlu0 %v2910_v43, %s3174_s28  ;;  %v2141_v43 = vld [vmem:[%s3722_s11 + $0x8] sm:$0xff] }
0x2127   :  { %v1738_v45 = vpop.permute.xlu0 %1737 }
0x2128   :  { %v1740_v26 = vmul.f32 %v2908_v37, %v1738_v45  ;;  %v2058_v37 = vld [vmem:[%s3720_s9 + $0x10] sm:$0xff] }
0x2129   :  { %v2774_v40 = vpack.c.bf16 %v2059_v39, %v2058_v37  ;;  %v2142_v45 = vld [vmem:[%s3722_s11 + $0x10] sm:$0xff] }
0x212a   :  { %1743 = vrot.lane.b32.xlu1 %v1740_v26, %s3188_s0 }
0x219c   :  { %v1744_v46 = vpop.permute.xlu1 %1743 }
0x219d   :  { %2608 = vmatmul.mubr.msk.f32.vlgmr.msra.gmra.mrb[14].mxu1 %vm274_vm2, %v1744_v46  ;;  %v2143_v46 = vld [vmem:[%s3722_s11 + $0x18] sm:$0xff] }
0x219e   :  { %2766 = vmatpush3.bf16.msra.mxu1 %v3510_v44  ;;  %2629 = vmatprep.mubr.msk.f32.mxu1 %vm3186_vm0, %v3187_v1 }
0x219f   :  { %2767 = vmatprep.subr.bf16.mxu1 %v3185_v0 }
0x21a2   :  { %2769 = vmatpush3.bf16.msra.mxu1 %v3514_v47 }
0x21a3   :  { %2776 = vmatprep.subr.bf16.mxu1 %v3185_v0 }
0x2270   :  { %v1813_v49 = vpop.f32.mrb[14].mxu1 }
0x2271   :  { %v1817_v50 = vadd.f32 %v1813_v49, %v1741_v48  ;;  %v2609_v51 = vpop.f32.mrb[15].mxu1  ;;  %v2780_v48 = vpack.c.bf16 %v2143_v46, %v2142_v45  ;;  %v2145_v49 = vld [vmem:[%s3722_s11 + $0x28] sm:$0xff] }
0x2273   :  { %2911 = vtanh.f32 %v1817_v50  ;;  %v2314_v53 = vmul.f32 -1.442695, %v1817_v50 }
0x2275   :  { %2913 = vpow2.f32 %v2314_v53 }
0x227d   :  { %v2912_v52 = vpop.eup %2911 }
0x227e   :  { %1827 = vrot.lane.b32.xlu0 %v2912_v52, %s3174_s28 }
0x227f   :  { %v2914_v44 = vpop.eup %2913 }
0x2280   :  { %v1821_v54 = vadd.f32 1.0, %v2914_v44 }
0x2282   :  { %2915 = vrcp.f32 %v1821_v54 }
0x228c   :  { %v2916_v55 = vpop.eup %2915 }
0x228d   :  { %v1825_v47 = vmul.f32 %v2916_v55, %v1734_v42  ;;  %v2140_v42 = vld [vmem:[%s3722_s11] sm:$0xff] }
0x228e   :  { %v2777_v26 = vpack.c.bf16 %v2141_v43, %v2140_v42 }
0x22f0   :  { %v1828_v56 = vpop.permute.xlu0 %1827 }
0x22f1   :  { %v1830_v57 = vmul.f32 %v2916_v55, %v1828_v56  ;;  %v2147_v56 = vld [vmem:[%s3722_s11 + $0x38] sm:$0xff] }
0x22f3   :  { %1832 = vrot.lane.b32.xlu1 %v1830_v57, %s3188_s0 }
0x2365   :  { %v1833_v58 = vpop.permute.xlu1 %1832 }
0x2366   :  { %v1835_v59 = vadd.f32 %v1833_v58, %v1825_v47 }
0x2368   :  { %2917 = vtanh.f32 %v1835_v59 }
0x2372   :  { %v2918_v60 = vpop.eup %2917 }
0x2373   :  { %1838 = vrot.lane.b32.xlu0 %v2918_v60, %s3174_s28 }
0x23e5   :  { %v1839_v61 = vpop.permute.xlu0 %1838 }
0x23e6   :  { %v1841_v62 = vmul.f32 %v2916_v55, %v1839_v61  ;;  %v2146_v55 = vld [vmem:[%s3722_s11 + $0x30] sm:$0xff] }
0x23e7   :  { %v2786_v57 = vpack.c.bf16 %v2147_v56, %v2146_v55 }
0x23e8   :  { %1844 = vrot.lane.b32.xlu1 %v1841_v62, %s3188_s0 }
0x245a   :  { %v1845_v8 = vpop.permute.xlu1 %1844 }
0x245b   :  { %2619 = vmatmul.mubr.msk.f32.vlgmr.msra.gmra.mrb[20].mxu0 %vm274_vm2, %v1845_v8 }
0x245c   :  { %2640 = vmatprep.mubr.msk.f32.mxu0 %vm3186_vm0, %v3187_v1  ;;  %2772 = vmatpush3.bf16.msra.mxu0 %v2771_v38 }
0x245d   :  { %2773 = vmatprep.subr.bf16.mxu0 %v3185_v0 }
0x2460   :  { %2775 = vmatpush3.bf16.msra.mxu0 %v2774_v40 }
0x252e   :  { %v1914_v2 = vpop.f32.mrb[20].mxu0 }
0x252f   :  { %v1918_v3 = vadd.f32 %v1914_v2, %v1842_v63  ;;  %v2620_v4 = vpop.f32.mrb[21].mxu0 }
0x2531   :  { %2919 = vtanh.f32 %v1918_v3  ;;  %v2316_v5 = vmul.f32 -1.442695, %v1918_v3 }
0x2533   :  { %2921 = vpow2.f32 %v2316_v5 }
0x253b   :  { %v2920_v13 = vpop.eup %2919 }
0x253c   :  { %1928 = vrot.lane.b32.xlu0 %v2920_v13, %s3174_s28 }
0x253d   :  { %v2922_v6 = vpop.eup %2921 }
0x253e   :  { %v1922_v7 = vadd.f32 1.0, %v2922_v6 }
0x2540   :  { %2923 = vrcp.f32 %v1922_v7 }
0x254a   :  { %v2924_v9 = vpop.eup %2923 }
0x254b   :  { %v1926_v12 = vmul.f32 %v2924_v9, %v1835_v59 }
0x25ae   :  { %v1929_v10 = vpop.permute.xlu0 %1928 }
0x25af   :  { %v1931_v11 = vmul.f32 %v2924_v9, %v1929_v10 }
0x25b1   :  { %1933 = vrot.lane.b32.xlu1 %v1931_v11, %s3188_s0 }
0x2623   :  { %v1934_v14 = vpop.permute.xlu1 %1933 }
0x2624   :  { %v1936_v16 = vadd.f32 %v1934_v14, %v1926_v12 }
0x2626   :  { %2925 = vtanh.f32 %v1936_v16 }
0x2630   :  { %v2926_v17 = vpop.eup %2925 }
0x2631   :  { %1939 = vrot.lane.b32.xlu0 %v2926_v17, %s3174_s28 }
0x26a3   :  { %v1940_v18 = vpop.permute.xlu0 %1939 }
0x26a4   :  { %v1942_v19 = vmul.f32 %v2924_v9, %v1940_v18 }
0x26a6   :  { %1945 = vrot.lane.b32.xlu1 %v1942_v19, %s3188_s0 }
0x2718   :  { %v1946_v20 = vpop.permute.xlu1 %1945 }
0x2719   :  { %2630 = vmatmul.mubr.msk.f32.vlgmr.msra.gmra.mrb[16].mxu1 %vm274_vm2, %v1946_v20 }
0x271a   :  { %2659 = vmatprep.mubr.msk.f32.mxu1 %vm3186_vm0, %v3187_v1  ;;  %2778 = vmatpush3.bf16.msra.mxu1 %v2777_v26 }
0x271b   :  { %2779 = vmatprep.subr.bf16.mxu1 %v3185_v0 }
0x271e   :  { %2781 = vmatpush3.bf16.msra.mxu1 %v2780_v48 }
0x271f   :  { %2782 = vmatprep.subr.bf16.mxu1 %v3185_v0 }
0x27ec   :  { %v2015_v22 = vpop.f32.mrb[16].mxu1 }
0x27ed   :  { %v2019_v23 = vadd.f32 %v2015_v22, %v1943_v21  ;;  %v2631_v24 = vpop.f32.mrb[17].mxu1 }
0x27ef   :  { %2927 = vtanh.f32 %v2019_v23  ;;  %v2318_v27 = vmul.f32 -1.442695, %v2019_v23 }
0x27f1   :  { %2929 = vpow2.f32 %v2318_v27 }
0x27f9   :  { %v2928_v25 = vpop.eup %2927 }
0x27fa   :  { %2029 = vrot.lane.b32.xlu0 %v2928_v25, %s3174_s28 }
0x27fb   :  { %v2930_v28 = vpop.eup %2929 }
0x27fc   :  { %v2023_v29 = vadd.f32 1.0, %v2930_v28 }
0x27fe   :  { %2931 = vrcp.f32 %v2023_v29 }
0x2808   :  { %v2932_v30 = vpop.eup %2931 }
0x2809   :  { %v2027_v33 = vmul.f32 %v2932_v30, %v1936_v16 }
0x286c   :  { %v2030_v31 = vpop.permute.xlu0 %2029 }
0x286d   :  { %v2032_v32 = vmul.f32 %v2932_v30, %v2030_v31 }
0x286f   :  { %2034 = vrot.lane.b32.xlu1 %v2032_v32, %s3188_s0 }
0x28e1   :  { %v2035_v1 = vpop.permute.xlu1 %2034 }
0x28e2   :  { %v2037_v34 = vadd.f32 %v2035_v1, %v2027_v33 }
0x28e4   :  { %2933 = vtanh.f32 %v2037_v34 }
0x28ee   :  { %v2934_v41 = vpop.eup %2933 }
0x28ef   :  { %2040 = vrot.lane.b32.xlu0 %v2934_v41, %s3174_s28 }
0x28f3   :  { %1106 = vrot.lane.b32.xlu0 %v3540_v15, %s3189_s8  ;;  %v2144_v15 = vld [vmem:[%s3722_s11 + $0x20] sm:$0xff] }
0x28f4   :  { %v2783_v52 = vpack.c.bf16 %v2145_v49, %v2144_v15 }
0x28f6   :  { %2784 = vmatpush3.bf16.msra.mxu1 %v2783_v52 }
0x28f7   :  { %2785 = vmatprep.subr.bf16.mxu1 %v3185_v0  ;;  %v2319_v0 = vld [vmem:[#allocation16] ss:$0 sm:$0xff] }
0x28fa   :  { %2787 = vmatpush3.bf16.msra.mxu1 %v2786_v57 }
0x2961   :  { %v2041_v50 = vpop.permute.xlu0 %2040 }
0x2962   :  { %v2043_v51 = vmul.f32 %v2932_v30, %v2041_v50 }
0x2964   :  { %2045 = vrot.lane.b32.xlu1 %v2043_v51, %s3188_s0 }
0x2965   :  { %v1107_v53 = vpop.permute.xlu0 %1106 }
0x2966   :  { %1109 = vst.msk [vmem:[#allocation19] sm:$0xf] %vm381_vm3, %v1107_v53 }
0x2968   :  { %2051 = vrot.lane.b32.xlu1 %v2037_v34, %s3189_s8 }
0x29d6   :  { %v2046_v44 = vpop.permute.xlu1 %2045 }
0x29d7   :  { %2049 = vst.msk [vmem:[#allocation18 + $0x4] sm:$0xf] %vm381_vm3, %v2046_v44  ;;  %2641 = vmatmul.mubr.msk.f32.vlgmr.msra.gmra.mrb[22].mxu0 %vm274_vm2, %v2046_v44 }
0x29da   :  { %v2052_v54 = vpop.permute.xlu1 %2051 }
0x29db   :  { %2055 = vst.msk [vmem:[#allocation19 + $0x4] sm:$0xf] %vm381_vm3, %v2052_v54 }
0x2aaa   :  { %v2135_v47 = vpop.f32.mrb[22].mxu0 }
0x2aab   :  { %v2136_v58 = vadd.f32 %v2319_v0, %v2135_v47  ;;  %v2642_v59 = vpop.f32.mrb[23].mxu0 }
0x2aad   :  { %v2139_v60 = vmax.f32 %v2136_v58, 0.0 }
0x2aaf   :  { %2660 = vmatmul.mubr.msk.f32.vlgmr.msra.gmra.mrb[18].mxu1 %vm2155_vm4, %v2139_v60 }
0x2ab0   :  { %3126 = shalt.err (!%p3123_p12)
}
0x2ab1   :  { %s3127_s26 = scalar_lea.hbm %s3725_s14, 128 }
0x2ab2   :  { %p3128_p13 = scmp.ne.s32.totalorder %s3725_s14, %s3127_s26  ;;  %p3131_p0 = scmp.lt.u32.totalorder %s3127_s26, %s3725_s14 }
0x2ab4   :  { %p3133_p1 = pnand %p3131_p0, %p3128_p13 }
0x2ab6   :  { %3136 = shalt.err (!%p3133_p1)
}
0x2ab7   :  { %2249 = dma.vmem_to_hbm [thread:$0]  %s2244_s23, 128, %s3725_s14, [#allocation6], %s3174_s28, %s3174_s28, %s3175_s29  }
0x2ab8   :  { %s3137_s9 = scalar_lea.vmem %s3668_s4, 128  ;;  %p3142_p3 = scmp.lt.s32.totalorder %s3668_s4, %s3668_s4 }
0x2ab9   :  { %p3138_p2 = scmp.ne.s32.totalorder %s3668_s4, %s3137_s9  ;;  %p3143_p4 = scmp.lt.s32.totalorder %s3137_s9, %s3137_s9 }
0x2abb   :  { %p3144_p5 = por %p3143_p4, %p3142_p3 }
0x2abd   :  { %p3145_p6 = pnand %p3144_p5, %p3138_p2 }
0x2abf   :  { %3148 = shalt.err (!%p3145_p6)
}
0x2ac0   :  { %s3149_s18 = scalar_lea.hbm %s3726_s15, 128 }
0x2ac1   :  { %p3150_p7 = scmp.ne.s32.totalorder %s3726_s15, %s3149_s18  ;;  %p3153_p8 = scmp.lt.u32.totalorder %s3149_s18, %s3726_s15 }
0x2ac3   :  { %p3155_p9 = pnand %p3153_p8, %p3150_p7 }
0x2ac5   :  { %3158 = shalt.err (!%p3155_p9)
}
0x2ac6   :  { %2261 = dma.vmem_to_hbm [thread:$0]  %s3668_s4, 128, %s3726_s15, [#allocation20], %s3174_s28, %s3174_s28, %s3175_s29  }
0x2ac7   :  { %v2321_v61 = vld [vmem:[%s3723_s12] ss:$0 sm:$0xff]  ;;  %s3728_s23 = sld [smem:[#allocation28_spill]] }
0x2b82   :  { %v2225_v62 = vpop.f32.mrb[18].mxu1 }
0x2b83   :  { %v2226_v8 = vadd.f32 %v2321_v61, %v2225_v62  ;;  %v2661_v63 = vpop.f32.mrb[19].mxu1 }
0x2b85   :  { %v2323_v2 = vmul.f32 -1.442695, %v2226_v8 }
0x2b87   :  { %2935 = vpow2.f32 %v2323_v2 }
0x2b91   :  { %v2936_v3 = vpop.eup %2935 }
0x2b92   :  { %v2232_v4 = vadd.f32 1.0, %v2936_v3 }
0x2b94   :  { %2937 = vrcp.f32 %v2232_v4 }
0x2b9e   :  { %v2938_v13 = vpop.eup %2937 }
0x2b9f   :  { %2235 = vst [vmem:[%s3728_s23] sm:$0xf] %v2938_v13 }
0x2ba0   :  { %3169 = dma.done.wait [#allocation6], 128  }
0x2ba1   :  { %3170 = vsyncadd [#allocation6], 4294967168 }
0x2ba2   :  { %3171 = dma.done.wait [#allocation20], 128  }
0x2ba3   :  { %3172 = vsyncadd [#allocation20], 4294967168 }
0x2ba4   :  { %2270 = vsyncpa [#allocation5], 1 }
0x2ba5   :  { %2271 = vsyncpa [#allocation8], 1 }
0x2ba6   :  { %2272 = vsyncpa [#allocation11], 1 }
0x2ba7   :  { %2273 = vsyncpa [#allocation14], 1 }
0x2ba8   :  { %2274 = vsyncpa [#allocation17], 1 }
0x2ba9   :  { %2275 = vsyncpa [#allocation6], 1 }
0x2baa   :  { %2276 = vsyncpa [#allocation20], 1 }

</bundles_post_ra>
